<compile_context>
chip_gen: v6e
topology: v6e:2x2x1
jax: 0.10.0
libtpu: 0.0.40
codegen_flags: <defaults>
</compile_context>

<pallas_src>
import functools

import numpy as np
import jax
import jax.numpy as jnp
from jax.experimental import pallas as pl
from jax.experimental.pallas import tpu as pltpu


# ------------------------------------------------------------------ config -----
INPUT_DIM = 32
PRENET_SIZES = [32, 16]
CBHG_DIM = 16                 # == prenet output dim
CBHG_K = 4
CBHG_PROJECTIONS = [32, 24]   # projections[-1] != in_dim -> pre_highway is exercised
NUM_HIGHWAYS = 4
N_BANK_OFFSETS = 4            # union of conv-bank tap offsets {-2,-1,0,+1} for K=4


# --------------------------------------------------- fused feed-forward kernel -
def _ff_kernel(x_ref, w1_ref, b1_ref, w2_ref, b2_ref,
               wbank_ref, bscale_ref, bshift_ref,
               wp1_ref, p1scale_ref, p1shift_ref,
               wp2_ref, p2scale_ref, p2shift_ref,
               wpre_ref, hwh_ref, hbh_ref, hwt_ref, hbt_ref,
               wgif_ref, bgif_ref, wgib_ref, bgib_ref,
               gif_ref, gib_ref,
               pad0_ref, pad1_ref, pad2_ref,
               *, n_highways):
    f32 = jnp.float32
    bf16 = jnp.bfloat16
    x = x_ref[0].astype(bf16)                          # (T, IN)
    T = x.shape[0]
    D = hwh_ref.shape[-1]

    # ---- Prenet ----
    # TODO(synk): nn.Dropout(0.5) is identity in eval mode; train-mode dropout not implemented.
    h = jnp.maximum(jnp.dot(x, w1_ref[...], preferred_element_type=f32) + b1_ref[...], 0.0)
    pre = jnp.maximum(jnp.dot(h.astype(bf16), w2_ref[...],
                              preferred_element_type=f32) + b2_ref[...], 0.0)   # (T, D) f32

    # ---- conv1d bank (k = 1..K), conv -> ReLU -> BN, as ONE packed matmul ----
    # im2col over the union of tap offsets {-2,-1,0,+1}; weight packed host-side.
    pad0_ref[...] = jnp.zeros(pad0_ref.shape, pad0_ref.dtype)   # (T+3, D), zero pads
    pad0_ref[2:2 + T, :] = pre
    im_b = jnp.concatenate([pad0_ref[o:o + T, :] for o in range(N_BANK_OFFSETS)],
                           axis=-1).astype(bf16)                # (T, 4*D)
    bank = jnp.dot(im_b, wbank_ref[...], preferred_element_type=f32)
    bank = jnp.maximum(bank, 0.0) * bscale_ref[...] + bshift_ref[...]           # (T, K*D)

    # ---- MaxPool1d(kernel=2, stride=1, left pad) : y[t] = max(x[t-1], x[t]) ----
    pad1_ref[1:1 + T, :] = bank
    pad1_ref[0:1, :] = bank[0:1, :]            # duplicate row 0 == -inf left pad semantics
    mp = jnp.maximum(pad1_ref[0:T, :], bank)                                     # (T, K*D)

    # ---- conv1d projection 1 (k=3, conv -> ReLU -> BN), im2col matmul ----
    zrow_kd = jnp.zeros((1, bank.shape[1]), f32)
    pad1_ref[0:1, :] = zrow_kd
    pad1_ref[T + 1:T + 2, :] = zrow_kd
    pad1_ref[1:1 + T, :] = mp
    im1 = jnp.concatenate([pad1_ref[o:o + T, :] for o in range(3)],
                          axis=-1).astype(bf16)                 # (T, 3*K*D)
    pj1 = jnp.dot(im1, wp1_ref[...], preferred_element_type=f32)
    pj1 = jnp.maximum(pj1, 0.0) * p1scale_ref[...] + p1shift_ref[...]            # (T, P1)

    # ---- conv1d projection 2 (k=3, conv -> BN, no ReLU) ----
    pad2_ref[...] = jnp.zeros(pad2_ref.shape, pad2_ref.dtype)
    pad2_ref[1:1 + T, :] = pj1
    im2 = jnp.concatenate([pad2_ref[o:o + T, :] for o in range(3)],
                          axis=-1).astype(bf16)                 # (T, 3*P1)
    pj2 = jnp.dot(im2, wp2_ref[...], preferred_element_type=f32)
    pj2 = pj2 * p2scale_ref[...] + p2shift_ref[...]                              # (T, P2)

    # ---- pre_highway (projections[-1] != in_dim in this config) + residual ----
    hx = jnp.dot(pj2.astype(bf16), wpre_ref[...], preferred_element_type=f32) + pre   # (T, D)

    # ---- 4 highway layers ----
    for i in range(n_highways):
        hx16 = hx.astype(bf16)
        hh = jnp.maximum(jnp.dot(hx16, hwh_ref[i], preferred_element_type=f32) + hbh_ref[i], 0.0)
        tt = jax.nn.sigmoid(jnp.dot(hx16, hwt_ref[i], preferred_element_type=f32) + hbt_ref[i])
        hx = hh * tt + hx * (1.0 - tt)

    # ---- GRU input projections, hoisted out of the recurrent loop ----
    hx16 = hx.astype(bf16)
    gif = jnp.dot(hx16, wgif_ref[...], preferred_element_type=f32) + bgif_ref[...]   # (T, 3D)
    gib = jnp.dot(hx16, wgib_ref[...], preferred_element_type=f32) + bgib_ref[...]
    for g in range(3):                                   # split per gate (r, z, n) once here
        gif_ref[0, g] = gif[:, g * D:(g + 1) * D]
        gib_ref[0, g] = gib[:, g * D:(g + 1) * D]


_FF_WEIGHT_NAMES = ['w1', 'b1', 'w2', 'b2',
                    'wbank', 'bscale', 'bshift',
                    'wp1', 'p1scale', 'p1shift',
                    'wp2', 'p2scale', 'p2shift',
                    'wpre', 'hwh', 'hbh', 'hwt', 'hbt',
                    'wgif', 'bgif', 'wgib', 'bgib']


def ff_fused(x, q):
    B, T, IN = x.shape
    D, K = CBHG_DIM, CBHG_K
    P1 = CBHG_PROJECTIONS[0]
    weights = [q[n] for n in _FF_WEIGHT_NAMES]

    def full_spec(arr):
        zeros = (0,) * arr.ndim
        return pl.BlockSpec(arr.shape, lambda b, _z=zeros: _z)

    in_specs = [pl.BlockSpec((1, T, IN), lambda b: (b, 0, 0))] + [full_spec(w) for w in weights]
    out_specs = (pl.BlockSpec((1, 3, T, D), lambda b: (b, 0, 0, 0)),
                 pl.BlockSpec((1, 3, T, D), lambda b: (b, 0, 0, 0)))

    kern = functools.partial(_ff_kernel, n_highways=NUM_HIGHWAYS)
    gif, gib = pl.pallas_call(
        kern,
        out_shape=(jax.ShapeDtypeStruct((B, 3, T, D), jnp.float32),
                   jax.ShapeDtypeStruct((B, 3, T, D), jnp.float32)),
        grid=(B,),
        in_specs=in_specs,
        out_specs=out_specs,
        scratch_shapes=[pltpu.VMEM((T + 3, D), jnp.float32),        # bank im2col pad
                        pltpu.VMEM((T + 2, K * D), jnp.float32),    # maxpool / proj1 pad
                        pltpu.VMEM((T + 2, P1), jnp.float32)],      # proj2 pad
        compiler_params=pltpu.CompilerParams(dimension_semantics=("parallel",)),
    )(x, *weights)
    return gif, gib


# ----------------------------------------------------- bidirectional GRU -------
def _bigru_kernel(gif_ref, gib_ref, whf_ref, bhf_ref, whb_ref, bhb_ref, o_ref):
    f32 = jnp.float32
    bf16 = jnp.bfloat16
    B, _, T, D = gif_ref.shape
    whf = whf_ref[...]; bhf = bhf_ref[...]     # (3, D, D) bf16 / (3, 1, D) f32
    whb = whb_ref[...]; bhb = bhb_ref[...]

    def cell(gi_r, gi_z, gi_n, h_prev, wh, bh):
        h16 = h_prev.astype(bf16)
        gh_r = jnp.dot(h16, wh[0], preferred_element_type=f32) + bh[0]
        gh_z = jnp.dot(h16, wh[1], preferred_element_type=f32) + bh[1]
        gh_n = jnp.dot(h16, wh[2], preferred_element_type=f32) + bh[2]
        r = jax.nn.sigmoid(gi_r + gh_r)
        z = jax.nn.sigmoid(gi_z + gh_z)
        n = jnp.tanh(gi_n + r * gh_n)
        return (1.0 - z) * n + z * h_prev

    hf = jnp.zeros((B, D), f32)
    hb = jnp.zeros((B, D), f32)
    # Fully unrolled time loop; fwd/bwd recurrences interleaved so each direction's
    # matmul + sigmoid/tanh latency is hidden behind the other's.
    for t in range(T):
        tb = T - 1 - t
        hf = cell(gif_ref[:, 0, t, :], gif_ref[:, 1, t, :], gif_ref[:, 2, t, :], hf, whf, bhf)
        hb = cell(gib_ref[:, 0, tb, :], gib_ref[:, 1, tb, :], gib_ref[:, 2, tb, :], hb, whb, bhb)
        o_ref[:, t, 0:D] = hf
        o_ref[:, tb, D:2 * D] = hb


def bigru_fused(gif, gib, whf, bhf, whb, bhb):
    B, _, T, D = gif.shape
    return pl.pallas_call(
        _bigru_kernel,
        out_shape=jax.ShapeDtypeStruct((B, T, 2 * D), jnp.float32),
    )(gif, gib, whf, bhf, whb, bhb)


# ------------------------------------------------------------------ params -----
def init_params(key):
    keys = jax.random.split(key, 32)
    it = iter(keys)

    def nrm(shape, scale=0.1):
        return jax.random.normal(next(it), shape, jnp.float32) * scale

    eps = 1e-5
    bn_scale = lambda c: jnp.full((1, c), 1.0 / np.sqrt(1.0 + eps), jnp.float32)  # gamma/sqrt(var+eps)
    bn_shift = lambda c: jnp.zeros((1, c), jnp.float32)                           # beta - mean*scale

    p = {}
    p['pre_w1'] = nrm((INPUT_DIM, PRENET_SIZES[0]))
    p['pre_b1'] = nrm((1, PRENET_SIZES[0]))
    p['pre_w2'] = nrm((PRENET_SIZES[0], PRENET_SIZES[1]))
    p['pre_b2'] = nrm((1, PRENET_SIZES[1]))

    D = CBHG_DIM
    p['bank_w'] = [nrm((k, D, D)) for k in range(1, CBHG_K + 1)]       # torch (Cout,Cin,k) transposed
    p['bank_scale'] = [bn_scale(D) for _ in range(CBHG_K)]
    p['bank_shift'] = [bn_shift(D) for _ in range(CBHG_K)]

    p['proj1_w'] = nrm((3, CBHG_K * D, CBHG_PROJECTIONS[0]))
    p['proj1_scale'] = bn_scale(CBHG_PROJECTIONS[0])
    p['proj1_shift'] = bn_shift(CBHG_PROJECTIONS[0])
    p['proj2_w'] = nrm((3, CBHG_PROJECTIONS[0], CBHG_PROJECTIONS[1]))
    p['proj2_scale'] = bn_scale(CBHG_PROJECTIONS[1])
    p['proj2_shift'] = bn_shift(CBHG_PROJECTIONS[1])

    p['pre_hw_w'] = nrm((CBHG_PROJECTIONS[1], D))                      # Linear(proj[-1], in_dim, bias=False)

    p['hw_wh'] = nrm((NUM_HIGHWAYS, D, D))
    p['hw_bh'] = jnp.zeros((NUM_HIGHWAYS, 1, D), jnp.float32)          # Highway H.bias = 0
    p['hw_wt'] = nrm((NUM_HIGHWAYS, D, D))
    p['hw_bt'] = jnp.full((NUM_HIGHWAYS, 1, D), -1.0, jnp.float32)     # Highway T.bias = -1

    p['gru_wif'] = nrm((D, 3 * D)); p['gru_whf'] = nrm((D, 3 * D))
    p['gru_bif'] = nrm((1, 3 * D)); p['gru_bhf'] = nrm((1, 3 * D))
    p['gru_wib'] = nrm((D, 3 * D)); p['gru_whb'] = nrm((D, 3 * D))
    p['gru_bib'] = nrm((1, 3 * D)); p['gru_bhb'] = nrm((1, 3 * D))
    return p


def pack_params(p):
    """Host-side weight packing: im2col-packed conv weights, bf16 matmul operands,
    per-gate GRU hidden weights. Done once, outside the kernels."""
    D, K = CBHG_DIM, CBHG_K
    P1, P2 = CBHG_PROJECTIONS
    f32 = np.float32
    tobf = lambda a: jnp.asarray(np.asarray(a, f32), jnp.bfloat16)
    tof = lambda a: jnp.asarray(np.asarray(a, f32), jnp.float32)

    q = {}
    q['w1'] = tobf(p['pre_w1']); q['b1'] = tof(p['pre_b1'])
    q['w2'] = tobf(p['pre_w2']); q['b2'] = tof(p['pre_b2'])

    # conv bank packed over tap offsets {-2,-1,0,+1}: (4*D, K*D)
    Wb = np.zeros((N_BANK_OFFSETS * D, K * D), f32)
    for k in range(1, K + 1):
        wk = np.asarray(p['bank_w'][k - 1], f32)            # (k, D, D)
        for o in range(N_BANK_OFFSETS):
            tap = (o - 2) + k // 2
            if 0 <= tap < k:
                Wb[o * D:(o + 1) * D, (k - 1) * D:k * D] = wk[tap]
    q['wbank'] = jnp.asarray(Wb, jnp.bfloat16)
    q['bscale'] = tof(np.concatenate([np.asarray(s, f32) for s in p['bank_scale']], axis=1))
    q['bshift'] = tof(np.concatenate([np.asarray(s, f32) for s in p['bank_shift']], axis=1))

    q['wp1'] = tobf(np.asarray(p['proj1_w'], f32).reshape(3 * K * D, P1))
    q['p1scale'] = tof(p['proj1_scale']); q['p1shift'] = tof(p['proj1_shift'])
    q['wp2'] = tobf(np.asarray(p['proj2_w'], f32).reshape(3 * P1, P2))
    q['p2scale'] = tof(p['proj2_scale']); q['p2shift'] = tof(p['proj2_shift'])

    q['wpre'] = tobf(p['pre_hw_w'])
    q['hwh'] = tobf(p['hw_wh']); q['hbh'] = tof(p['hw_bh'])
    q['hwt'] = tobf(p['hw_wt']); q['hbt'] = tof(p['hw_bt'])

    q['wgif'] = tobf(p['gru_wif']); q['bgif'] = tof(p['gru_bif'])
    q['wgib'] = tobf(p['gru_wib']); q['bgib'] = tof(p['gru_bib'])

    def split_gate_w(w):   # (D, 3D) -> (3, D, D)
        w = np.asarray(w, f32)
        return np.stack([w[:, g * D:(g + 1) * D] for g in range(3)], axis=0)

    def split_gate_b(b):   # (1, 3D) -> (3, 1, D)
        b = np.asarray(b, f32)
        return np.stack([b[:, g * D:(g + 1) * D] for g in range(3)], axis=0)

    q['whf'] = jnp.asarray(split_gate_w(p['gru_whf']), jnp.bfloat16)
    q['bhf'] = jnp.asarray(split_gate_b(p['gru_bhf']), jnp.float32)
    q['whb'] = jnp.asarray(split_gate_w(p['gru_whb']), jnp.bfloat16)
    q['bhb'] = jnp.asarray(split_gate_b(p['gru_bhb']), jnp.float32)
    return q


# ------------------------------------------------------------------ forward ----
def local_encoder_forward(inputs, q):
    """inputs: (B, T, input_dim) float32. Returns (B, T, 2*CBHG_DIM)."""
    # TODO(synk): input_lengths / pack_padded_sequence path not implemented (called with None).
    gif, gib = ff_fused(inputs, q)
    return bigru_fused(gif, gib, q['whf'], q['bhf'], q['whb'], q['bhb'])


# ---------------------------------------------------- pure numpy reference -----
def reference_forward_np(inputs, p):
    def cvt(v):
        return [np.asarray(e, np.float64) for e in v] if isinstance(v, list) else np.asarray(v, np.float64)
    P = {k: cvt(v) for k, v in p.items()}
    x = np.asarray(inputs, np.float64)
    B, T, _ = x.shape
    D = CBHG_DIM

    h = np.maximum(x @ P['pre_w1'] + P['pre_b1'], 0.0)
    pre = np.maximum(h @ P['pre_w2'] + P['pre_b2'], 0.0)

    def conv_bn(xx, w, scale, shift, k, relu):
        pad = k // 2
        xp = np.pad(xx, ((0, 0), (pad, pad), (0, 0)))
        Tt = xx.shape[1]
        acc = np.zeros((xx.shape[0], Tt, w.shape[2]))
        for tap in range(k):
            acc += xp[:, tap:tap + Tt, :] @ w[tap]
        if relu:
            acc = np.maximum(acc, 0.0)
        return acc * scale + shift

    bank = [conv_bn(pre, P['bank_w'][k - 1], P['bank_scale'][k - 1], P['bank_shift'][k - 1], k, True)
            for k in range(1, CBHG_K + 1)]
    x = np.concatenate(bank, axis=-1)
    xp = np.concatenate([np.full((B, 1, x.shape[-1]), -np.inf), x], axis=1)
    x = np.maximum(xp[:, :-1, :], xp[:, 1:, :])
    x = conv_bn(x, P['proj1_w'], P['proj1_scale'], P['proj1_shift'], 3, True)
    x = conv_bn(x, P['proj2_w'], P['proj2_scale'], P['proj2_shift'], 3, False)
    if x.shape[-1] != D:
        x = x @ P['pre_hw_w']
    x = x + pre

    def sigmoid(v):
        return 1.0 / (1.0 + np.exp(-v))

    for i in range(NUM_HIGHWAYS):
        Hh = np.maximum(x @ P['hw_wh'][i] + P['hw_bh'][i], 0.0)
        Tt = sigmoid(x @ P['hw_wt'][i] + P['hw_bt'][i])
        x = Hh * Tt + x * (1.0 - Tt)

    def gru_dir(xseq, wi, wh, bi, bh, reverse):
        hcur = np.zeros((B, D))
        outs = np.zeros((T, B, D))
        times = range(T - 1, -1, -1) if reverse else range(T)
        for t in times:
            gi = xseq[:, t, :] @ wi + bi
            gh = hcur @ wh + bh
            r = sigmoid(gi[:, :D] + gh[:, :D])
            z = sigmoid(gi[:, D:2 * D] + gh[:, D:2 * D])
            n = np.tanh(gi[:, 2 * D:] + r * gh[:, 2 * D:])
            hcur = (1.0 - z) * n + z * hcur
            outs[t] = hcur
        return outs

    of = gru_dir(x, P['gru_wif'], P['gru_whf'], P['gru_bif'], P['gru_bhf'], False)
    ob = gru_dir(x, P['gru_wib'], P['gru_whb'], P['gru_bib'], P['gru_bhb'], True)
    out = np.concatenate([of, ob], axis=-1)
    return np.transpose(out, (1, 0, 2))


# ------------------------------------------------------------------ main -------
if __name__ == "__main__":
    B, T = 2, 8
    key = jax.random.PRNGKey(0)
    k_in, k_par = jax.random.split(key)
    inputs = jax.random.normal(k_in, (B, T, INPUT_DIM), jnp.float32)
    params = init_params(k_par)
    packed = pack_params(params)

    out = local_encoder_forward(inputs, packed)
    out = jax.block_until_ready(out)

    assert out.shape == (B, T, 2 * CBHG_DIM), out.shape
    assert bool(jnp.all(jnp.isfinite(out)))

    ref = reference_forward_np(inputs, params)
    # bf16 matmul operands (f32 accumulation) -> slightly relaxed tolerance.
    np.testing.assert_allclose(np.asarray(out), ref, rtol=2e-2, atol=2e-2)

    print("KERNEL_OK")
</pallas_src>

<mosaic_0001>
module attributes {stable_mosaic.version = 11 : i64} {
  func.func @_ff_kernel(%arg0: i32, %arg1: memref<1x8x32xf32, #tpu.memory_space<vmem>>, %arg2: memref<32x32xbf16, #tpu.memory_space<vmem>>, %arg3: memref<1x32xf32, #tpu.memory_space<vmem>>, %arg4: memref<32x16xbf16, #tpu.memory_space<vmem>>, %arg5: memref<1x16xf32, #tpu.memory_space<vmem>>, %arg6: memref<64x64xbf16, #tpu.memory_space<vmem>>, %arg7: memref<1x64xf32, #tpu.memory_space<vmem>>, %arg8: memref<1x64xf32, #tpu.memory_space<vmem>>, %arg9: memref<192x32xbf16, #tpu.memory_space<vmem>>, %arg10: memref<1x32xf32, #tpu.memory_space<vmem>>, %arg11: memref<1x32xf32, #tpu.memory_space<vmem>>, %arg12: memref<96x24xbf16, #tpu.memory_space<vmem>>, %arg13: memref<1x24xf32, #tpu.memory_space<vmem>>, %arg14: memref<1x24xf32, #tpu.memory_space<vmem>>, %arg15: memref<24x16xbf16, #tpu.memory_space<vmem>>, %arg16: memref<4x16x16xbf16, #tpu.memory_space<vmem>>, %arg17: memref<4x1x16xf32, #tpu.memory_space<vmem>>, %arg18: memref<4x16x16xbf16, #tpu.memory_space<vmem>>, %arg19: memref<4x1x16xf32, #tpu.memory_space<vmem>>, %arg20: memref<16x48xbf16, #tpu.memory_space<vmem>>, %arg21: memref<1x48xf32, #tpu.memory_space<vmem>>, %arg22: memref<16x48xbf16, #tpu.memory_space<vmem>>, %arg23: memref<1x48xf32, #tpu.memory_space<vmem>>, %arg24: memref<1x3x8x16xf32, #tpu.memory_space<vmem>>, %arg25: memref<1x3x8x16xf32, #tpu.memory_space<vmem>>, %arg26: memref<11x16xf32, #tpu.memory_space<vmem>>, %arg27: memref<10x64xf32, #tpu.memory_space<vmem>>, %arg28: memref<10x32xf32, #tpu.memory_space<vmem>>) attributes {dimension_semantics = [#tpu.dimension_semantics<parallel>], iteration_bounds = array<i64: 2>, scalar_prefetch = 0 : i64, scratch_operands = 3 : i64, tpu.core_type = #tpu.core_type<tc>, window_params = [{transform_indices = @transform_0, window_bounds = array<i64: 1, 8, 32>}, {pipeline_mode = #tpu.pipeline_mode<synchronous>, transform_indices = @transform_1, window_bounds = array<i64: 32, 32>}, {pipeline_mode = #tpu.pipeline_mode<synchronous>, transform_indices = @transform_2, window_bounds = array<i64: 1, 32>}, {pipeline_mode = #tpu.pipeline_mode<synchronous>, transform_indices = @transform_3, window_bounds = array<i64: 32, 16>}, {pipeline_mode = #tpu.pipeline_mode<synchronous>, transform_indices = @transform_4, window_bounds = array<i64: 1, 16>}, {pipeline_mode = #tpu.pipeline_mode<synchronous>, transform_indices = @transform_5, window_bounds = array<i64: 64, 64>}, {pipeline_mode = #tpu.pipeline_mode<synchronous>, transform_indices = @transform_6, window_bounds = array<i64: 1, 64>}, {pipeline_mode = #tpu.pipeline_mode<synchronous>, transform_indices = @transform_7, window_bounds = array<i64: 1, 64>}, {pipeline_mode = #tpu.pipeline_mode<synchronous>, transform_indices = @transform_8, window_bounds = array<i64: 192, 32>}, {pipeline_mode = #tpu.pipeline_mode<synchronous>, transform_indices = @transform_9, window_bounds = array<i64: 1, 32>}, {pipeline_mode = #tpu.pipeline_mode<synchronous>, transform_indices = @transform_10, window_bounds = array<i64: 1, 32>}, {pipeline_mode = #tpu.pipeline_mode<synchronous>, transform_indices = @transform_11, window_bounds = array<i64: 96, 24>}, {pipeline_mode = #tpu.pipeline_mode<synchronous>, transform_indices = @transform_12, window_bounds = array<i64: 1, 24>}, {pipeline_mode = #tpu.pipeline_mode<synchronous>, transform_indices = @transform_13, window_bounds = array<i64: 1, 24>}, {pipeline_mode = #tpu.pipeline_mode<synchronous>, transform_indices = @transform_14, window_bounds = array<i64: 24, 16>}, {pipeline_mode = #tpu.pipeline_mode<synchronous>, transform_indices = @transform_15, window_bounds = array<i64: 4, 16, 16>}, {pipeline_mode = #tpu.pipeline_mode<synchronous>, transform_indices = @transform_16, window_bounds = array<i64: 4, 1, 16>}, {pipeline_mode = #tpu.pipeline_mode<synchronous>, transform_indices = @transform_17, window_bounds = array<i64: 4, 16, 16>}, {pipeline_mode = #tpu.pipeline_mode<synchronous>, transform_indices = @transform_18, window_bounds = array<i64: 4, 1, 16>}, {pipeline_mode = #tpu.pipeline_mode<synchronous>, transform_indices = @transform_19, window_bounds = array<i64: 16, 48>}, {pipeline_mode = #tpu.pipeline_mode<synchronous>, transform_indices = @transform_20, window_bounds = array<i64: 1, 48>}, {pipeline_mode = #tpu.pipeline_mode<synchronous>, transform_indices = @transform_21, window_bounds = array<i64: 16, 48>}, {pipeline_mode = #tpu.pipeline_mode<synchronous>, transform_indices = @transform_22, window_bounds = array<i64: 1, 48>}, {transform_indices = @transform_23, window_bounds = array<i64: 1, 3, 8, 16>}, {transform_indices = @transform_24, window_bounds = array<i64: 1, 3, 8, 16>}]} {
    %c0 = arith.constant 0 : index
    %c0_0 = arith.constant 0 : index
    %c0_1 = arith.constant 0 : index
    %0 = vector.load %arg1[%c0, %c0_0, %c0_1] : memref<1x8x32xf32, #tpu.memory_space<vmem>>, vector<1x8x32xf32>
    %1 = vector.shape_cast %0 : vector<1x8x32xf32> to vector<8x32xf32>
    %2 = arith.truncf %1 : vector<8x32xf32> to vector<8x32xbf16>
    %c0_2 = arith.constant 0 : index
    %c0_3 = arith.constant 0 : index
    %3 = vector.load %arg2[%c0_2, %c0_3] : memref<32x32xbf16, #tpu.memory_space<vmem>>, vector<32x32xbf16>
    %cst = arith.constant dense<0.000000e+00> : vector<8x32xf32>
    %4 = tpu.matmul %2, %3, %cst {dimension_numbers = #tpu.dot_dimension_numbers<[1], [0], [0], [1], [0, 0, 1, 1], [], []>} : vector<8x32xbf16>, vector<32x32xbf16>, vector<8x32xf32> -> vector<8x32xf32>
    %c0_4 = arith.constant 0 : index
    %c0_5 = arith.constant 0 : index
    %5 = vector.load %arg3[%c0_4, %c0_5] : memref<1x32xf32, #tpu.memory_space<vmem>>, vector<1x32xf32>
    %6 = vector.broadcast %5 : vector<1x32xf32> to vector<8x32xf32>
    %7 = arith.addf %4, %6 : vector<8x32xf32>
    %cst_6 = arith.constant 0.000000e+00 : f32
    %8 = vector.broadcast %cst_6 : f32 to vector<8x32xf32>
    %9 = arith.maximumf %7, %8 : vector<8x32xf32>
    %10 = arith.truncf %9 : vector<8x32xf32> to vector<8x32xbf16>
    %c0_7 = arith.constant 0 : index
    %c0_8 = arith.constant 0 : index
    %11 = vector.load %arg4[%c0_7, %c0_8] : memref<32x16xbf16, #tpu.memory_space<vmem>>, vector<32x16xbf16>
    %cst_9 = arith.constant dense<0.000000e+00> : vector<8x16xf32>
    %12 = tpu.matmul %10, %11, %cst_9 {dimension_numbers = #tpu.dot_dimension_numbers<[1], [0], [0], [1], [0, 0, 1, 1], [], []>} : vector<8x32xbf16>, vector<32x16xbf16>, vector<8x16xf32> -> vector<8x16xf32>
    %c0_10 = arith.constant 0 : index
    %c0_11 = arith.constant 0 : index
    %13 = vector.load %arg5[%c0_10, %c0_11] : memref<1x16xf32, #tpu.memory_space<vmem>>, vector<1x16xf32>
    %14 = vector.broadcast %13 : vector<1x16xf32> to vector<8x16xf32>
    %15 = arith.addf %12, %14 : vector<8x16xf32>
    %cst_12 = arith.constant 0.000000e+00 : f32
    %16 = vector.broadcast %cst_12 : f32 to vector<8x16xf32>
    %17 = arith.maximumf %15, %16 : vector<8x16xf32>
    %cst_13 = arith.constant 0.000000e+00 : f32
    %18 = vector.broadcast %cst_13 : f32 to vector<11x16xf32>
    %c0_14 = arith.constant 0 : index
    %c0_15 = arith.constant 0 : index
    %19 = vector.load %arg26[%c0_14, %c0_15] : memref<11x16xf32, #tpu.memory_space<vmem>>, vector<11x16xf32>
    tpu.vector_store %arg26[%c0_14, %c0_15], %18 {strides = array<i32>} : memref<11x16xf32, #tpu.memory_space<vmem>>, vector<11x16xf32>,
    %c2 = arith.constant 2 : index
    %c0_16 = arith.constant 0 : index
    %20 = vector.load %arg26[%c2, %c0_16] : memref<11x16xf32, #tpu.memory_space<vmem>>, vector<8x16xf32>
    tpu.vector_store %arg26[%c2, %c0_16], %17 {strides = array<i32>} : memref<11x16xf32, #tpu.memory_space<vmem>>, vector<8x16xf32>,
    %c0_17 = arith.constant 0 : index
    %c0_18 = arith.constant 0 : index
    %21 = vector.load %arg26[%c0_17, %c0_18] : memref<11x16xf32, #tpu.memory_space<vmem>>, vector<8x16xf32>
    %c1 = arith.constant 1 : index
    %c0_19 = arith.constant 0 : index
    %22 = vector.load %arg26[%c1, %c0_19] : memref<11x16xf32, #tpu.memory_space<vmem>>, vector<8x16xf32>
    %c2_20 = arith.constant 2 : index
    %c0_21 = arith.constant 0 : index
    %23 = vector.load %arg26[%c2_20, %c0_21] : memref<11x16xf32, #tpu.memory_space<vmem>>, vector<8x16xf32>
    %c3 = arith.constant 3 : index
    %c0_22 = arith.constant 0 : index
    %24 = vector.load %arg26[%c3, %c0_22] : memref<11x16xf32, #tpu.memory_space<vmem>>, vector<8x16xf32>
    %25 = tpu.concatenate %21, %22, %23, %24 in 1 : vector<8x16xf32>, vector<8x16xf32>, vector<8x16xf32>, vector<8x16xf32> -> vector<8x64xf32>
    %26 = arith.truncf %25 : vector<8x64xf32> to vector<8x64xbf16>
    %c0_23 = arith.constant 0 : index
    %c0_24 = arith.constant 0 : index
    %27 = vector.load %arg6[%c0_23, %c0_24] : memref<64x64xbf16, #tpu.memory_space<vmem>>, vector<64x64xbf16>
    %cst_25 = arith.constant dense<0.000000e+00> : vector<8x64xf32>
    %28 = tpu.matmul %26, %27, %cst_25 {dimension_numbers = #tpu.dot_dimension_numbers<[1], [0], [0], [1], [0, 0, 1, 1], [], []>} : vector<8x64xbf16>, vector<64x64xbf16>, vector<8x64xf32> -> vector<8x64xf32>
    %cst_26 = arith.constant 0.000000e+00 : f32
    %29 = vector.broadcast %cst_26 : f32 to vector<8x64xf32>
    %30 = arith.maximumf %28, %29 : vector<8x64xf32>
    %c0_27 = arith.constant 0 : index
    %c0_28 = arith.constant 0 : index
    %31 = vector.load %arg7[%c0_27, %c0_28] : memref<1x64xf32, #tpu.memory_space<vmem>>, vector<1x64xf32>
    %32 = vector.broadcast %31 : vector<1x64xf32> to vector<8x64xf32>
    %33 = arith.mulf %30, %32 : vector<8x64xf32>
    %c0_29 = arith.constant 0 : index
    %c0_30 = arith.constant 0 : index
    %34 = vector.load %arg8[%c0_29, %c0_30] : memref<1x64xf32, #tpu.memory_space<vmem>>, vector<1x64xf32>
    %35 = vector.broadcast %34 : vector<1x64xf32> to vector<8x64xf32>
    %36 = arith.addf %33, %35 : vector<8x64xf32>
    %c1_31 = arith.constant 1 : index
    %c0_32 = arith.constant 0 : index
    %37 = vector.load %arg27[%c1_31, %c0_32] : memref<10x64xf32, #tpu.memory_space<vmem>>, vector<8x64xf32>
    tpu.vector_store %arg27[%c1_31, %c0_32], %36 {strides = array<i32>} : memref<10x64xf32, #tpu.memory_space<vmem>>, vector<8x64xf32>,
    %38 = vector.extract_strided_slice %36 {offsets = [0, 0], sizes = [1, 64], strides = [1, 1]} : vector<8x64xf32> to vector<1x64xf32>
    %c0_33 = arith.constant 0 : index
    %c0_34 = arith.constant 0 : index
    %39 = vector.load %arg27[%c0_33, %c0_34] : memref<10x64xf32, #tpu.memory_space<vmem>>, vector<1x64xf32>
    tpu.vector_store %arg27[%c0_33, %c0_34], %38 {strides = array<i32>} : memref<10x64xf32, #tpu.memory_space<vmem>>, vector<1x64xf32>,
    %c0_35 = arith.constant 0 : index
    %c0_36 = arith.constant 0 : index
    %40 = vector.load %arg27[%c0_35, %c0_36] : memref<10x64xf32, #tpu.memory_space<vmem>>, vector<8x64xf32>
    %41 = arith.maximumf %40, %36 : vector<8x64xf32>
    %cst_37 = arith.constant 0.000000e+00 : f32
    %42 = vector.broadcast %cst_37 : f32 to vector<1x64xf32>
    %c0_38 = arith.constant 0 : index
    %c0_39 = arith.constant 0 : index
    %43 = vector.load %arg27[%c0_38, %c0_39] : memref<10x64xf32, #tpu.memory_space<vmem>>, vector<1x64xf32>
    tpu.vector_store %arg27[%c0_38, %c0_39], %42 {strides = array<i32>} : memref<10x64xf32, #tpu.memory_space<vmem>>, vector<1x64xf32>,
    %c9 = arith.constant 9 : index
    %c0_40 = arith.constant 0 : index
    %44 = vector.load %arg27[%c9, %c0_40] : memref<10x64xf32, #tpu.memory_space<vmem>>, vector<1x64xf32>
    tpu.vector_store %arg27[%c9, %c0_40], %42 {strides = array<i32>} : memref<10x64xf32, #tpu.memory_space<vmem>>, vector<1x64xf32>,
    %c1_41 = arith.constant 1 : index
    %c0_42 = arith.constant 0 : index
    %45 = vector.load %arg27[%c1_41, %c0_42] : memref<10x64xf32, #tpu.memory_space<vmem>>, vector<8x64xf32>
    tpu.vector_store %arg27[%c1_41, %c0_42], %41 {strides = array<i32>} : memref<10x64xf32, #tpu.memory_space<vmem>>, vector<8x64xf32>,
    %c0_43 = arith.constant 0 : index
    %c0_44 = arith.constant 0 : index
    %46 = vector.load %arg27[%c0_43, %c0_44] : memref<10x64xf32, #tpu.memory_space<vmem>>, vector<8x64xf32>
    %c1_45 = arith.constant 1 : index
    %c0_46 = arith.constant 0 : index
    %47 = vector.load %arg27[%c1_45, %c0_46] : memref<10x64xf32, #tpu.memory_space<vmem>>, vector<8x64xf32>
    %c2_47 = arith.constant 2 : index
    %c0_48 = arith.constant 0 : index
    %48 = vector.load %arg27[%c2_47, %c0_48] : memref<10x64xf32, #tpu.memory_space<vmem>>, vector<8x64xf32>
    %49 = tpu.concatenate %46, %47, %48 in 1 : vector<8x64xf32>, vector<8x64xf32>, vector<8x64xf32> -> vector<8x192xf32>
    %50 = arith.truncf %49 : vector<8x192xf32> to vector<8x192xbf16>
    %c0_49 = arith.constant 0 : index
    %c0_50 = arith.constant 0 : index
    %51 = vector.load %arg9[%c0_49, %c0_50] : memref<192x32xbf16, #tpu.memory_space<vmem>>, vector<192x32xbf16>
    %cst_51 = arith.constant dense<0.000000e+00> : vector<8x32xf32>
    %52 = tpu.matmul %50, %51, %cst_51 {dimension_numbers = #tpu.dot_dimension_numbers<[1], [0], [0], [1], [0, 0, 1, 1], [], []>} : vector<8x192xbf16>, vector<192x32xbf16>, vector<8x32xf32> -> vector<8x32xf32>
    %cst_52 = arith.constant 0.000000e+00 : f32
    %53 = vector.broadcast %cst_52 : f32 to vector<8x32xf32>
    %54 = arith.maximumf %52, %53 : vector<8x32xf32>
    %c0_53 = arith.constant 0 : index
    %c0_54 = arith.constant 0 : index
    %55 = vector.load %arg10[%c0_53, %c0_54] : memref<1x32xf32, #tpu.memory_space<vmem>>, vector<1x32xf32>
    %56 = vector.broadcast %55 : vector<1x32xf32> to vector<8x32xf32>
    %57 = arith.mulf %54, %56 : vector<8x32xf32>
    %c0_55 = arith.constant 0 : index
    %c0_56 = arith.constant 0 : index
    %58 = vector.load %arg11[%c0_55, %c0_56] : memref<1x32xf32, #tpu.memory_space<vmem>>, vector<1x32xf32>
    %59 = vector.broadcast %58 : vector<1x32xf32> to vector<8x32xf32>
    %60 = arith.addf %57, %59 : vector<8x32xf32>
    %cst_57 = arith.constant 0.000000e+00 : f32
    %61 = vector.broadcast %cst_57 : f32 to vector<10x32xf32>
    %c0_58 = arith.constant 0 : index
    %c0_59 = arith.constant 0 : index
    %62 = vector.load %arg28[%c0_58, %c0_59] : memref<10x32xf32, #tpu.memory_space<vmem>>, vector<10x32xf32>
    tpu.vector_store %arg28[%c0_58, %c0_59], %61 {strides = array<i32>} : memref<10x32xf32, #tpu.memory_space<vmem>>, vector<10x32xf32>,
    %c1_60 = arith.constant 1 : index
    %c0_61 = arith.constant 0 : index
    %63 = vector.load %arg28[%c1_60, %c0_61] : memref<10x32xf32, #tpu.memory_space<vmem>>, vector<8x32xf32>
    tpu.vector_store %arg28[%c1_60, %c0_61], %60 {strides = array<i32>} : memref<10x32xf32, #tpu.memory_space<vmem>>, vector<8x32xf32>,
    %c0_62 = arith.constant 0 : index
    %c0_63 = arith.constant 0 : index
    %64 = vector.load %arg28[%c0_62, %c0_63] : memref<10x32xf32, #tpu.memory_space<vmem>>, vector<8x32xf32>
    %c1_64 = arith.constant 1 : index
    %c0_65 = arith.constant 0 : index
    %65 = vector.load %arg28[%c1_64, %c0_65] : memref<10x32xf32, #tpu.memory_space<vmem>>, vector<8x32xf32>
    %c2_66 = arith.constant 2 : index
    %c0_67 = arith.constant 0 : index
    %66 = vector.load %arg28[%c2_66, %c0_67] : memref<10x32xf32, #tpu.memory_space<vmem>>, vector<8x32xf32>
    %67 = tpu.concatenate %64, %65, %66 in 1 : vector<8x32xf32>, vector<8x32xf32>, vector<8x32xf32> -> vector<8x96xf32>
    %68 = arith.truncf %67 : vector<8x96xf32> to vector<8x96xbf16>
    %c0_68 = arith.constant 0 : index
    %c0_69 = arith.constant 0 : index
    %69 = vector.load %arg12[%c0_68, %c0_69] : memref<96x24xbf16, #tpu.memory_space<vmem>>, vector<96x24xbf16>
    %cst_70 = arith.constant dense<0.000000e+00> : vector<8x24xf32>
    %70 = tpu.matmul %68, %69, %cst_70 {dimension_numbers = #tpu.dot_dimension_numbers<[1], [0], [0], [1], [0, 0, 1, 1], [], []>} : vector<8x96xbf16>, vector<96x24xbf16>, vector<8x24xf32> -> vector<8x24xf32>
    %c0_71 = arith.constant 0 : index
    %c0_72 = arith.constant 0 : index
    %71 = vector.load %arg13[%c0_71, %c0_72] : memref<1x24xf32, #tpu.memory_space<vmem>>, vector<1x24xf32>
    %72 = vector.broadcast %71 : vector<1x24xf32> to vector<8x24xf32>
    %73 = arith.mulf %70, %72 : vector<8x24xf32>
    %c0_73 = arith.constant 0 : index
    %c0_74 = arith.constant 0 : index
    %74 = vector.load %arg14[%c0_73, %c0_74] : memref<1x24xf32, #tpu.memory_space<vmem>>, vector<1x24xf32>
    %75 = vector.broadcast %74 : vector<1x24xf32> to vector<8x24xf32>
    %76 = arith.addf %73, %75 : vector<8x24xf32>
    %77 = arith.truncf %76 : vector<8x24xf32> to vector<8x24xbf16>
    %c0_75 = arith.constant 0 : index
    %c0_76 = arith.constant 0 : index
    %78 = vector.load %arg15[%c0_75, %c0_76] : memref<24x16xbf16, #tpu.memory_space<vmem>>, vector<24x16xbf16>
    %cst_77 = arith.constant dense<0.000000e+00> : vector<8x16xf32>
    %79 = tpu.matmul %77, %78, %cst_77 {dimension_numbers = #tpu.dot_dimension_numbers<[1], [0], [0], [1], [0, 0, 1, 1], [], []>} : vector<8x24xbf16>, vector<24x16xbf16>, vector<8x16xf32> -> vector<8x16xf32>
    %80 = arith.addf %79, %17 : vector<8x16xf32>
    %81 = arith.truncf %80 : vector<8x16xf32> to vector<8x16xbf16>
    %c0_78 = arith.constant 0 : index
    %c0_79 = arith.constant 0 : index
    %c0_80 = arith.constant 0 : index
    %82 = vector.load %arg16[%c0_78, %c0_79, %c0_80] : memref<4x16x16xbf16, #tpu.memory_space<vmem>>, vector<1x16x16xbf16>
    %83 = vector.shape_cast %82 : vector<1x16x16xbf16> to vector<16x16xbf16>
    %cst_81 = arith.constant dense<0.000000e+00> : vector<8x16xf32>
    %84 = tpu.matmul %81, %83, %cst_81 {dimension_numbers = #tpu.dot_dimension_numbers<[1], [0], [0], [1], [0, 0, 1, 1], [], []>} : vector<8x16xbf16>, vector<16x16xbf16>, vector<8x16xf32> -> vector<8x16xf32>
    %c0_82 = arith.constant 0 : index
    %c0_83 = arith.constant 0 : index
    %c0_84 = arith.constant 0 : index
    %85 = vector.load %arg17[%c0_82, %c0_83, %c0_84] : memref<4x1x16xf32, #tpu.memory_space<vmem>>, vector<1x1x16xf32>
    %86 = vector.shape_cast %85 : vector<1x1x16xf32> to vector<1x16xf32>
    %87 = vector.broadcast %86 : vector<1x16xf32> to vector<8x16xf32>
    %88 = arith.addf %84, %87 : vector<8x16xf32>
    %cst_85 = arith.constant 0.000000e+00 : f32
    %89 = vector.broadcast %cst_85 : f32 to vector<8x16xf32>
    %90 = arith.maximumf %88, %89 : vector<8x16xf32>
    %c0_86 = arith.constant 0 : index
    %c0_87 = arith.constant 0 : index
    %c0_88 = arith.constant 0 : index
    %91 = vector.load %arg18[%c0_86, %c0_87, %c0_88] : memref<4x16x16xbf16, #tpu.memory_space<vmem>>, vector<1x16x16xbf16>
    %92 = vector.shape_cast %91 : vector<1x16x16xbf16> to vector<16x16xbf16>
    %cst_89 = arith.constant dense<0.000000e+00> : vector<8x16xf32>
    %93 = tpu.matmul %81, %92, %cst_89 {dimension_numbers = #tpu.dot_dimension_numbers<[1], [0], [0], [1], [0, 0, 1, 1], [], []>} : vector<8x16xbf16>, vector<16x16xbf16>, vector<8x16xf32> -> vector<8x16xf32>
    %c0_90 = arith.constant 0 : index
    %c0_91 = arith.constant 0 : index
    %c0_92 = arith.constant 0 : index
    %94 = vector.load %arg19[%c0_90, %c0_91, %c0_92] : memref<4x1x16xf32, #tpu.memory_space<vmem>>, vector<1x1x16xf32>
    %95 = vector.shape_cast %94 : vector<1x1x16xf32> to vector<1x16xf32>
    %96 = vector.broadcast %95 : vector<1x16xf32> to vector<8x16xf32>
    %97 = arith.addf %93, %96 : vector<8x16xf32>
    %98 = arith.negf %97 : vector<8x16xf32>
    %99 = math.exp %98 : vector<8x16xf32>
    %cst_93 = arith.constant 1.000000e+00 : f32
    %100 = vector.broadcast %cst_93 : f32 to vector<8x16xf32>
    %101 = arith.addf %100, %99 : vector<8x16xf32>
    %102 = arith.divf %100, %101 : vector<8x16xf32>
    %103 = arith.mulf %90, %102 : vector<8x16xf32>
    %cst_94 = arith.constant 1.000000e+00 : f32
    %104 = vector.broadcast %cst_94 : f32 to vector<8x16xf32>
    %105 = arith.subf %104, %102 : vector<8x16xf32>
    %106 = arith.mulf %80, %105 : vector<8x16xf32>
    %107 = arith.addf %103, %106 : vector<8x16xf32>
    %108 = arith.truncf %107 : vector<8x16xf32> to vector<8x16xbf16>
    %c1_95 = arith.constant 1 : index
    %c0_96 = arith.constant 0 : index
    %c0_97 = arith.constant 0 : index
    %109 = vector.load %arg16[%c1_95, %c0_96, %c0_97] : memref<4x16x16xbf16, #tpu.memory_space<vmem>>, vector<1x16x16xbf16>
    %110 = vector.shape_cast %109 : vector<1x16x16xbf16> to vector<16x16xbf16>
    %cst_98 = arith.constant dense<0.000000e+00> : vector<8x16xf32>
    %111 = tpu.matmul %108, %110, %cst_98 {dimension_numbers = #tpu.dot_dimension_numbers<[1], [0], [0], [1], [0, 0, 1, 1], [], []>} : vector<8x16xbf16>, vector<16x16xbf16>, vector<8x16xf32> -> vector<8x16xf32>
    %c1_99 = arith.constant 1 : index
    %c0_100 = arith.constant 0 : index
    %c0_101 = arith.constant 0 : index
    %112 = vector.load %arg17[%c1_99, %c0_100, %c0_101] : memref<4x1x16xf32, #tpu.memory_space<vmem>>, vector<1x1x16xf32>
    %113 = vector.shape_cast %112 : vector<1x1x16xf32> to vector<1x16xf32>
    %114 = vector.broadcast %113 : vector<1x16xf32> to vector<8x16xf32>
    %115 = arith.addf %111, %114 : vector<8x16xf32>
    %cst_102 = arith.constant 0.000000e+00 : f32
    %116 = vector.broadcast %cst_102 : f32 to vector<8x16xf32>
    %117 = arith.maximumf %115, %116 : vector<8x16xf32>
    %c1_103 = arith.constant 1 : index
    %c0_104 = arith.constant 0 : index
    %c0_105 = arith.constant 0 : index
    %118 = vector.load %arg18[%c1_103, %c0_104, %c0_105] : memref<4x16x16xbf16, #tpu.memory_space<vmem>>, vector<1x16x16xbf16>
    %119 = vector.shape_cast %118 : vector<1x16x16xbf16> to vector<16x16xbf16>
    %cst_106 = arith.constant dense<0.000000e+00> : vector<8x16xf32>
    %120 = tpu.matmul %108, %119, %cst_106 {dimension_numbers = #tpu.dot_dimension_numbers<[1], [0], [0], [1], [0, 0, 1, 1], [], []>} : vector<8x16xbf16>, vector<16x16xbf16>, vector<8x16xf32> -> vector<8x16xf32>
    %c1_107 = arith.constant 1 : index
    %c0_108 = arith.constant 0 : index
    %c0_109 = arith.constant 0 : index
    %121 = vector.load %arg19[%c1_107, %c0_108, %c0_109] : memref<4x1x16xf32, #tpu.memory_space<vmem>>, vector<1x1x16xf32>
    %122 = vector.shape_cast %121 : vector<1x1x16xf32> to vector<1x16xf32>
    %123 = vector.broadcast %122 : vector<1x16xf32> to vector<8x16xf32>
    %124 = arith.addf %120, %123 : vector<8x16xf32>
    %125 = arith.negf %124 : vector<8x16xf32>
    %126 = math.exp %125 : vector<8x16xf32>
    %cst_110 = arith.constant 1.000000e+00 : f32
    %127 = vector.broadcast %cst_110 : f32 to vector<8x16xf32>
    %128 = arith.addf %127, %126 : vector<8x16xf32>
    %129 = arith.divf %127, %128 : vector<8x16xf32>
    %130 = arith.mulf %117, %129 : vector<8x16xf32>
    %cst_111 = arith.constant 1.000000e+00 : f32
    %131 = vector.broadcast %cst_111 : f32 to vector<8x16xf32>
    %132 = arith.subf %131, %129 : vector<8x16xf32>
    %133 = arith.mulf %107, %132 : vector<8x16xf32>
    %134 = arith.addf %130, %133 : vector<8x16xf32>
    %135 = arith.truncf %134 : vector<8x16xf32> to vector<8x16xbf16>
    %c2_112 = arith.constant 2 : index
    %c0_113 = arith.constant 0 : index
    %c0_114 = arith.constant 0 : index
    %136 = vector.load %arg16[%c2_112, %c0_113, %c0_114] : memref<4x16x16xbf16, #tpu.memory_space<vmem>>, vector<1x16x16xbf16>
    %137 = vector.shape_cast %136 : vector<1x16x16xbf16> to vector<16x16xbf16>
    %cst_115 = arith.constant dense<0.000000e+00> : vector<8x16xf32>
    %138 = tpu.matmul %135, %137, %cst_115 {dimension_numbers = #tpu.dot_dimension_numbers<[1], [0], [0], [1], [0, 0, 1, 1], [], []>} : vector<8x16xbf16>, vector<16x16xbf16>, vector<8x16xf32> -> vector<8x16xf32>
    %c2_116 = arith.constant 2 : index
    %c0_117 = arith.constant 0 : index
    %c0_118 = arith.constant 0 : index
    %139 = vector.load %arg17[%c2_116, %c0_117, %c0_118] : memref<4x1x16xf32, #tpu.memory_space<vmem>>, vector<1x1x16xf32>
    %140 = vector.shape_cast %139 : vector<1x1x16xf32> to vector<1x16xf32>
    %141 = vector.broadcast %140 : vector<1x16xf32> to vector<8x16xf32>
    %142 = arith.addf %138, %141 : vector<8x16xf32>
    %cst_119 = arith.constant 0.000000e+00 : f32
    %143 = vector.broadcast %cst_119 : f32 to vector<8x16xf32>
    %144 = arith.maximumf %142, %143 : vector<8x16xf32>
    %c2_120 = arith.constant 2 : index
    %c0_121 = arith.constant 0 : index
    %c0_122 = arith.constant 0 : index
    %145 = vector.load %arg18[%c2_120, %c0_121, %c0_122] : memref<4x16x16xbf16, #tpu.memory_space<vmem>>, vector<1x16x16xbf16>
    %146 = vector.shape_cast %145 : vector<1x16x16xbf16> to vector<16x16xbf16>
    %cst_123 = arith.constant dense<0.000000e+00> : vector<8x16xf32>
    %147 = tpu.matmul %135, %146, %cst_123 {dimension_numbers = #tpu.dot_dimension_numbers<[1], [0], [0], [1], [0, 0, 1, 1], [], []>} : vector<8x16xbf16>, vector<16x16xbf16>, vector<8x16xf32> -> vector<8x16xf32>
    %c2_124 = arith.constant 2 : index
    %c0_125 = arith.constant 0 : index
    %c0_126 = arith.constant 0 : index
    %148 = vector.load %arg19[%c2_124, %c0_125, %c0_126] : memref<4x1x16xf32, #tpu.memory_space<vmem>>, vector<1x1x16xf32>
    %149 = vector.shape_cast %148 : vector<1x1x16xf32> to vector<1x16xf32>
    %150 = vector.broadcast %149 : vector<1x16xf32> to vector<8x16xf32>
    %151 = arith.addf %147, %150 : vector<8x16xf32>
    %152 = arith.negf %151 : vector<8x16xf32>
    %153 = math.exp %152 : vector<8x16xf32>
    %cst_127 = arith.constant 1.000000e+00 : f32
    %154 = vector.broadcast %cst_127 : f32 to vector<8x16xf32>
    %155 = arith.addf %154, %153 : vector<8x16xf32>
    %156 = arith.divf %154, %155 : vector<8x16xf32>
    %157 = arith.mulf %144, %156 : vector<8x16xf32>
    %cst_128 = arith.constant 1.000000e+00 : f32
    %158 = vector.broadcast %cst_128 : f32 to vector<8x16xf32>
    %159 = arith.subf %158, %156 : vector<8x16xf32>
    %160 = arith.mulf %134, %159 : vector<8x16xf32>
    %161 = arith.addf %157, %160 : vector<8x16xf32>
    %162 = arith.truncf %161 : vector<8x16xf32> to vector<8x16xbf16>
    %c3_129 = arith.constant 3 : index
    %c0_130 = arith.constant 0 : index
    %c0_131 = arith.constant 0 : index
    %163 = vector.load %arg16[%c3_129, %c0_130, %c0_131] : memref<4x16x16xbf16, #tpu.memory_space<vmem>>, vector<1x16x16xbf16>
    %164 = vector.shape_cast %163 : vector<1x16x16xbf16> to vector<16x16xbf16>
    %cst_132 = arith.constant dense<0.000000e+00> : vector<8x16xf32>
    %165 = tpu.matmul %162, %164, %cst_132 {dimension_numbers = #tpu.dot_dimension_numbers<[1], [0], [0], [1], [0, 0, 1, 1], [], []>} : vector<8x16xbf16>, vector<16x16xbf16>, vector<8x16xf32> -> vector<8x16xf32>
    %c3_133 = arith.constant 3 : index
    %c0_134 = arith.constant 0 : index
    %c0_135 = arith.constant 0 : index
    %166 = vector.load %arg17[%c3_133, %c0_134, %c0_135] : memref<4x1x16xf32, #tpu.memory_space<vmem>>, vector<1x1x16xf32>
    %167 = vector.shape_cast %166 : vector<1x1x16xf32> to vector<1x16xf32>
    %168 = vector.broadcast %167 : vector<1x16xf32> to vector<8x16xf32>
    %169 = arith.addf %165, %168 : vector<8x16xf32>
    %cst_136 = arith.constant 0.000000e+00 : f32
    %170 = vector.broadcast %cst_136 : f32 to vector<8x16xf32>
    %171 = arith.maximumf %169, %170 : vector<8x16xf32>
    %c3_137 = arith.constant 3 : index
    %c0_138 = arith.constant 0 : index
    %c0_139 = arith.constant 0 : index
    %172 = vector.load %arg18[%c3_137, %c0_138, %c0_139] : memref<4x16x16xbf16, #tpu.memory_space<vmem>>, vector<1x16x16xbf16>
    %173 = vector.shape_cast %172 : vector<1x16x16xbf16> to vector<16x16xbf16>
    %cst_140 = arith.constant dense<0.000000e+00> : vector<8x16xf32>
    %174 = tpu.matmul %162, %173, %cst_140 {dimension_numbers = #tpu.dot_dimension_numbers<[1], [0], [0], [1], [0, 0, 1, 1], [], []>} : vector<8x16xbf16>, vector<16x16xbf16>, vector<8x16xf32> -> vector<8x16xf32>
    %c3_141 = arith.constant 3 : index
    %c0_142 = arith.constant 0 : index
    %c0_143 = arith.constant 0 : index
    %175 = vector.load %arg19[%c3_141, %c0_142, %c0_143] : memref<4x1x16xf32, #tpu.memory_space<vmem>>, vector<1x1x16xf32>
    %176 = vector.shape_cast %175 : vector<1x1x16xf32> to vector<1x16xf32>
    %177 = vector.broadcast %176 : vector<1x16xf32> to vector<8x16xf32>
    %178 = arith.addf %174, %177 : vector<8x16xf32>
    %179 = arith.negf %178 : vector<8x16xf32>
    %180 = math.exp %179 : vector<8x16xf32>
    %cst_144 = arith.constant 1.000000e+00 : f32
    %181 = vector.broadcast %cst_144 : f32 to vector<8x16xf32>
    %182 = arith.addf %181, %180 : vector<8x16xf32>
    %183 = arith.divf %181, %182 : vector<8x16xf32>
    %184 = arith.mulf %171, %183 : vector<8x16xf32>
    %cst_145 = arith.constant 1.000000e+00 : f32
    %185 = vector.broadcast %cst_145 : f32 to vector<8x16xf32>
    %186 = arith.subf %185, %183 : vector<8x16xf32>
    %187 = arith.mulf %161, %186 : vector<8x16xf32>
    %188 = arith.addf %184, %187 : vector<8x16xf32>
    %189 = arith.truncf %188 : vector<8x16xf32> to vector<8x16xbf16>
    %c0_146 = arith.constant 0 : index
    %c0_147 = arith.constant 0 : index
    %190 = vector.load %arg20[%c0_146, %c0_147] : memref<16x48xbf16, #tpu.memory_space<vmem>>, vector<16x48xbf16>
    %cst_148 = arith.constant dense<0.000000e+00> : vector<8x48xf32>
    %191 = tpu.matmul %189, %190, %cst_148 {dimension_numbers = #tpu.dot_dimension_numbers<[1], [0], [0], [1], [0, 0, 1, 1], [], []>} : vector<8x16xbf16>, vector<16x48xbf16>, vector<8x48xf32> -> vector<8x48xf32>
    %c0_149 = arith.constant 0 : index
    %c0_150 = arith.constant 0 : index
    %192 = vector.load %arg21[%c0_149, %c0_150] : memref<1x48xf32, #tpu.memory_space<vmem>>, vector<1x48xf32>
    %193 = vector.broadcast %192 : vector<1x48xf32> to vector<8x48xf32>
    %194 = arith.addf %191, %193 : vector<8x48xf32>
    %c0_151 = arith.constant 0 : index
    %c0_152 = arith.constant 0 : index
    %195 = vector.load %arg22[%c0_151, %c0_152] : memref<16x48xbf16, #tpu.memory_space<vmem>>, vector<16x48xbf16>
    %cst_153 = arith.constant dense<0.000000e+00> : vector<8x48xf32>
    %196 = tpu.matmul %189, %195, %cst_153 {dimension_numbers = #tpu.dot_dimension_numbers<[1], [0], [0], [1], [0, 0, 1, 1], [], []>} : vector<8x16xbf16>, vector<16x48xbf16>, vector<8x48xf32> -> vector<8x48xf32>
    %c0_154 = arith.constant 0 : index
    %c0_155 = arith.constant 0 : index
    %197 = vector.load %arg23[%c0_154, %c0_155] : memref<1x48xf32, #tpu.memory_space<vmem>>, vector<1x48xf32>
    %198 = vector.broadcast %197 : vector<1x48xf32> to vector<8x48xf32>
    %199 = arith.addf %196, %198 : vector<8x48xf32>
    %200 = vector.extract_strided_slice %194 {offsets = [0, 0], sizes = [8, 16], strides = [1, 1]} : vector<8x48xf32> to vector<8x16xf32>
    %c0_156 = arith.constant 0 : index
    %c0_157 = arith.constant 0 : index
    %c0_158 = arith.constant 0 : index
    %c0_159 = arith.constant 0 : index
    %201 = vector.load %arg24[%c0_156, %c0_157, %c0_158, %c0_159] : memref<1x3x8x16xf32, #tpu.memory_space<vmem>>, vector<1x1x8x16xf32>
    %202 = vector.shape_cast %201 : vector<1x1x8x16xf32> to vector<8x16xf32>
    %203 = vector.shape_cast %200 : vector<8x16xf32> to vector<1x1x8x16xf32>
    tpu.vector_store %arg24[%c0_156, %c0_157, %c0_158, %c0_159], %203 {strides = array<i32>} : memref<1x3x8x16xf32, #tpu.memory_space<vmem>>, vector<1x1x8x16xf32>,
    %204 = vector.extract_strided_slice %199 {offsets = [0, 0], sizes = [8, 16], strides = [1, 1]} : vector<8x48xf32> to vector<8x16xf32>
    %c0_160 = arith.constant 0 : index
    %c0_161 = arith.constant 0 : index
    %c0_162 = arith.constant 0 : index
    %c0_163 = arith.constant 0 : index
    %205 = vector.load %arg25[%c0_160, %c0_161, %c0_162, %c0_163] : memref<1x3x8x16xf32, #tpu.memory_space<vmem>>, vector<1x1x8x16xf32>
    %206 = vector.shape_cast %205 : vector<1x1x8x16xf32> to vector<8x16xf32>
    %207 = vector.shape_cast %204 : vector<8x16xf32> to vector<1x1x8x16xf32>
    tpu.vector_store %arg25[%c0_160, %c0_161, %c0_162, %c0_163], %207 {strides = array<i32>} : memref<1x3x8x16xf32, #tpu.memory_space<vmem>>, vector<1x1x8x16xf32>,
    %208 = vector.extract_strided_slice %194 {offsets = [0, 16], sizes = [8, 16], strides = [1, 1]} : vector<8x48xf32> to vector<8x16xf32>
    %c0_164 = arith.constant 0 : index
    %c1_165 = arith.constant 1 : index
    %c0_166 = arith.constant 0 : index
    %c0_167 = arith.constant 0 : index
    %209 = vector.load %arg24[%c0_164, %c1_165, %c0_166, %c0_167] : memref<1x3x8x16xf32, #tpu.memory_space<vmem>>, vector<1x1x8x16xf32>
    %210 = vector.shape_cast %209 : vector<1x1x8x16xf32> to vector<8x16xf32>
    %211 = vector.shape_cast %208 : vector<8x16xf32> to vector<1x1x8x16xf32>
    tpu.vector_store %arg24[%c0_164, %c1_165, %c0_166, %c0_167], %211 {strides = array<i32>} : memref<1x3x8x16xf32, #tpu.memory_space<vmem>>, vector<1x1x8x16xf32>,
    %212 = vector.extract_strided_slice %199 {offsets = [0, 16], sizes = [8, 16], strides = [1, 1]} : vector<8x48xf32> to vector<8x16xf32>
    %c0_168 = arith.constant 0 : index
    %c1_169 = arith.constant 1 : index
    %c0_170 = arith.constant 0 : index
    %c0_171 = arith.constant 0 : index
    %213 = vector.load %arg25[%c0_168, %c1_169, %c0_170, %c0_171] : memref<1x3x8x16xf32, #tpu.memory_space<vmem>>, vector<1x1x8x16xf32>
    %214 = vector.shape_cast %213 : vector<1x1x8x16xf32> to vector<8x16xf32>
    %215 = vector.shape_cast %212 : vector<8x16xf32> to vector<1x1x8x16xf32>
    tpu.vector_store %arg25[%c0_168, %c1_169, %c0_170, %c0_171], %215 {strides = array<i32>} : memref<1x3x8x16xf32, #tpu.memory_space<vmem>>, vector<1x1x8x16xf32>,
    %216 = vector.extract_strided_slice %194 {offsets = [0, 32], sizes = [8, 16], strides = [1, 1]} : vector<8x48xf32> to vector<8x16xf32>
    %c0_172 = arith.constant 0 : index
    %c2_173 = arith.constant 2 : index
    %c0_174 = arith.constant 0 : index
    %c0_175 = arith.constant 0 : index
    %217 = vector.load %arg24[%c0_172, %c2_173, %c0_174, %c0_175] : memref<1x3x8x16xf32, #tpu.memory_space<vmem>>, vector<1x1x8x16xf32>
    %218 = vector.shape_cast %217 : vector<1x1x8x16xf32> to vector<8x16xf32>
    %219 = vector.shape_cast %216 : vector<8x16xf32> to vector<1x1x8x16xf32>
    tpu.vector_store %arg24[%c0_172, %c2_173, %c0_174, %c0_175], %219 {strides = array<i32>} : memref<1x3x8x16xf32, #tpu.memory_space<vmem>>, vector<1x1x8x16xf32>,
    %220 = vector.extract_strided_slice %199 {offsets = [0, 32], sizes = [8, 16], strides = [1, 1]} : vector<8x48xf32> to vector<8x16xf32>
    %c0_176 = arith.constant 0 : index
    %c2_177 = arith.constant 2 : index
    %c0_178 = arith.constant 0 : index
    %c0_179 = arith.constant 0 : index
    %221 = vector.load %arg25[%c0_176, %c2_177, %c0_178, %c0_179] : memref<1x3x8x16xf32, #tpu.memory_space<vmem>>, vector<1x1x8x16xf32>
    %222 = vector.shape_cast %221 : vector<1x1x8x16xf32> to vector<8x16xf32>
    %223 = vector.shape_cast %220 : vector<8x16xf32> to vector<1x1x8x16xf32>
    tpu.vector_store %arg25[%c0_176, %c2_177, %c0_178, %c0_179], %223 {strides = array<i32>} : memref<1x3x8x16xf32, #tpu.memory_space<vmem>>, vector<1x1x8x16xf32>,
    return
  }
  func.func @transform_0(%arg0: i32) -> (i32, i32, i32) {
    %c0_i32 = arith.constant 0 : i32
    %c0_i32_0 = arith.constant 0 : i32
    %c0_i32_1 = arith.constant 0 : i32
    return %arg0, %c0_i32, %c0_i32_0 : i32, i32, i32
  }
  func.func @transform_1(%arg0: i32) -> (i32, i32) {
    %c0_i32 = arith.constant 0 : i32
    %c0_i32_0 = arith.constant 0 : i32
    %c0_i32_1 = arith.constant 0 : i32
    return %c0_i32, %c0_i32_0 : i32, i32
  }
  func.func @transform_2(%arg0: i32) -> (i32, i32) {
    %c0_i32 = arith.constant 0 : i32
    %c0_i32_0 = arith.constant 0 : i32
    %c0_i32_1 = arith.constant 0 : i32
    return %c0_i32, %c0_i32_0 : i32, i32
  }
  func.func @transform_3(%arg0: i32) -> (i32, i32) {
    %c0_i32 = arith.constant 0 : i32
    %c0_i32_0 = arith.constant 0 : i32
    %c0_i32_1 = arith.constant 0 : i32
    return %c0_i32, %c0_i32_0 : i32, i32
  }
  func.func @transform_4(%arg0: i32) -> (i32, i32) {
    %c0_i32 = arith.constant 0 : i32
    %c0_i32_0 = arith.constant 0 : i32
    %c0_i32_1 = arith.constant 0 : i32
    return %c0_i32, %c0_i32_0 : i32, i32
  }
  func.func @transform_5(%arg0: i32) -> (i32, i32) {
    %c0_i32 = arith.constant 0 : i32
    %c0_i32_0 = arith.constant 0 : i32
    %c0_i32_1 = arith.constant 0 : i32
    return %c0_i32, %c0_i32_0 : i32, i32
  }
  func.func @transform_6(%arg0: i32) -> (i32, i32) {
    %c0_i32 = arith.constant 0 : i32
    %c0_i32_0 = arith.constant 0 : i32
    %c0_i32_1 = arith.constant 0 : i32
    return %c0_i32, %c0_i32_0 : i32, i32
  }
  func.func @transform_7(%arg0: i32) -> (i32, i32) {
    %c0_i32 = arith.constant 0 : i32
    %c0_i32_0 = arith.constant 0 : i32
    %c0_i32_1 = arith.constant 0 : i32
    return %c0_i32, %c0_i32_0 : i32, i32
  }
  func.func @transform_8(%arg0: i32) -> (i32, i32) {
    %c0_i32 = arith.constant 0 : i32
    %c0_i32_0 = arith.constant 0 : i32
    %c0_i32_1 = arith.constant 0 : i32
    return %c0_i32, %c0_i32_0 : i32, i32
  }
  func.func @transform_9(%arg0: i32) -> (i32, i32) {
    %c0_i32 = arith.constant 0 : i32
    %c0_i32_0 = arith.constant 0 : i32
    %c0_i32_1 = arith.constant 0 : i32
    return %c0_i32, %c0_i32_0 : i32, i32
  }
  func.func @transform_10(%arg0: i32) -> (i32, i32) {
    %c0_i32 = arith.constant 0 : i32
    %c0_i32_0 = arith.constant 0 : i32
    %c0_i32_1 = arith.constant 0 : i32
    return %c0_i32, %c0_i32_0 : i32, i32
  }
  func.func @transform_11(%arg0: i32) -> (i32, i32) {
    %c0_i32 = arith.constant 0 : i32
    %c0_i32_0 = arith.constant 0 : i32
    %c0_i32_1 = arith.constant 0 : i32
    return %c0_i32, %c0_i32_0 : i32, i32
  }
  func.func @transform_12(%arg0: i32) -> (i32, i32) {
    %c0_i32 = arith.constant 0 : i32
    %c0_i32_0 = arith.constant 0 : i32
    %c0_i32_1 = arith.constant 0 : i32
    return %c0_i32, %c0_i32_0 : i32, i32
  }
  func.func @transform_13(%arg0: i32) -> (i32, i32) {
    %c0_i32 = arith.constant 0 : i32
    %c0_i32_0 = arith.constant 0 : i32
    %c0_i32_1 = arith.constant 0 : i32
    return %c0_i32, %c0_i32_0 : i32, i32
  }
  func.func @transform_14(%arg0: i32) -> (i32, i32) {
    %c0_i32 = arith.constant 0 : i32
    %c0_i32_0 = arith.constant 0 : i32
    %c0_i32_1 = arith.constant 0 : i32
    return %c0_i32, %c0_i32_0 : i32, i32
  }
  func.func @transform_15(%arg0: i32) -> (i32, i32, i32) {
    %c0_i32 = arith.constant 0 : i32
    %c0_i32_0 = arith.constant 0 : i32
    %c0_i32_1 = arith.constant 0 : i32
    %c0_i32_2 = arith.constant 0 : i32
    return %c0_i32, %c0_i32_0, %c0_i32_1 : i32, i32, i32
  }
  func.func @transform_16(%arg0: i32) -> (i32, i32, i32) {
    %c0_i32 = arith.constant 0 : i32
    %c0_i32_0 = arith.constant 0 : i32
    %c0_i32_1 = arith.constant 0 : i32
    %c0_i32_2 = arith.constant 0 : i32
    return %c0_i32, %c0_i32_0, %c0_i32_1 : i32, i32, i32
  }
  func.func @transform_17(%arg0: i32) -> (i32, i32, i32) {
    %c0_i32 = arith.constant 0 : i32
    %c0_i32_0 = arith.constant 0 : i32
    %c0_i32_1 = arith.constant 0 : i32
    %c0_i32_2 = arith.constant 0 : i32
    return %c0_i32, %c0_i32_0, %c0_i32_1 : i32, i32, i32
  }
  func.func @transform_18(%arg0: i32) -> (i32, i32, i32) {
    %c0_i32 = arith.constant 0 : i32
    %c0_i32_0 = arith.constant 0 : i32
    %c0_i32_1 = arith.constant 0 : i32
    %c0_i32_2 = arith.constant 0 : i32
    return %c0_i32, %c0_i32_0, %c0_i32_1 : i32, i32, i32
  }
  func.func @transform_19(%arg0: i32) -> (i32, i32) {
    %c0_i32 = arith.constant 0 : i32
    %c0_i32_0 = arith.constant 0 : i32
    %c0_i32_1 = arith.constant 0 : i32
    return %c0_i32, %c0_i32_0 : i32, i32
  }
  func.func @transform_20(%arg0: i32) -> (i32, i32) {
    %c0_i32 = arith.constant 0 : i32
    %c0_i32_0 = arith.constant 0 : i32
    %c0_i32_1 = arith.constant 0 : i32
    return %c0_i32, %c0_i32_0 : i32, i32
  }
  func.func @transform_21(%arg0: i32) -> (i32, i32) {
    %c0_i32 = arith.constant 0 : i32
    %c0_i32_0 = arith.constant 0 : i32
    %c0_i32_1 = arith.constant 0 : i32
    return %c0_i32, %c0_i32_0 : i32, i32
  }
  func.func @transform_22(%arg0: i32) -> (i32, i32) {
    %c0_i32 = arith.constant 0 : i32
    %c0_i32_0 = arith.constant 0 : i32
    %c0_i32_1 = arith.constant 0 : i32
    return %c0_i32, %c0_i32_0 : i32, i32
  }
  func.func @transform_23(%arg0: i32) -> (i32, i32, i32, i32) {
    %c0_i32 = arith.constant 0 : i32
    %c0_i32_0 = arith.constant 0 : i32
    %c0_i32_1 = arith.constant 0 : i32
    %c0_i32_2 = arith.constant 0 : i32
    return %arg0, %c0_i32, %c0_i32_0, %c0_i32_1 : i32, i32, i32, i32
  }
  func.func @transform_24(%arg0: i32) -> (i32, i32, i32, i32) {
    %c0_i32 = arith.constant 0 : i32
    %c0_i32_0 = arith.constant 0 : i32
    %c0_i32_1 = arith.constant 0 : i32
    %c0_i32_2 = arith.constant 0 : i32
    return %arg0, %c0_i32, %c0_i32_0, %c0_i32_1 : i32, i32, i32, i32
  }
}

</mosaic_0001>

<bundles_post_ra>
// kernel: tpu_custom_call.1
= control target key start
LH: loop header
LB: loop body
LE: loop exit
PB: predicated region body
PF: predicated region fallthrough
CT: control target
= control target key end

     0   :  { %s3158_s0 = inlined_call_operand.vmem [shape: f32[2,8,32], index: 0, kind: input, shape index: {}]   ;;  %s3159_s1 = inlined_call_operand.vmem [shape: bf16[32,32], index: 1, kind: input, shape index: {}]   ;;  %s3160_s2 = inlined_call_operand.vmem [shape: f32[1,32], index: 2, kind: input, shape index: {}]   ;;  %s3161_s3 = inlined_call_operand.vmem [shape: bf16[32,16], index: 3, kind: input, shape index: {}]   ;;  %s3162_s4 = inlined_call_operand.vmem [shape: f32[1,16], index: 4, kind: input, shape index: {}]   ;;  %s3163_s5 = inlined_call_operand.vmem [shape: bf16[64,64], index: 5, kind: input, shape index: {}]   ;;  %s3164_s6 = inlined_call_operand.vmem [shape: f32[1,64], index: 6, kind: input, shape index: {}]   ;;  %s3165_s7 = inlined_call_operand.vmem [shape: f32[1,64], index: 7, kind: input, shape index: {}]   ;;  %s3166_s8 = inlined_call_operand.vmem [shape: bf16[192,32], index: 8, kind: input, shape index: {}]   ;;  %s3167_s9 = inlined_call_operand.vmem [shape: f32[1,32], index: 9, kind: input, shape index: {}]   ;;  %s3168_s10 = inlined_call_operand.vmem [shape: f32[1,32], index: 10, kind: input, shape index: {}]   ;;  %s3169_s11 = inlined_call_operand.vmem [shape: bf16[96,24], index: 11, kind: input, shape index: {}]   ;;  %s3170_s12 = inlined_call_operand.vmem [shape: f32[1,24], index: 12, kind: input, shape index: {}]   ;;  %s3171_s13 = inlined_call_operand.vmem [shape: f32[1,24], index: 13, kind: input, shape index: {}]   ;;  %s3172_s14 = inlined_call_operand.vmem [shape: bf16[24,16], index: 14, kind: input, shape index: {}]   ;;  %s3173_s15 = inlined_call_operand.vmem [shape: bf16[4,16,16], index: 15, kind: input, shape index: {}]   ;;  %s3174_s16 = inlined_call_operand.vmem [shape: f32[4,1,16], index: 16, kind: input, shape index: {}]   ;;  %s3175_s17 = inlined_call_operand.vmem [shape: bf16[4,16,16], index: 17, kind: input, shape index: {}]   ;;  %s3176_s18 = inlined_call_operand.vmem [shape: f32[4,1,16], index: 18, kind: input, shape index: {}]   ;;  %s3177_s19 = inlined_call_operand.vmem [shape: bf16[16,48], index: 19, kind: input, shape index: {}]   ;;  %s3178_s20 = inlined_call_operand.vmem [shape: f32[1,48], index: 20, kind: input, shape index: {}]   ;;  %s3179_s21 = inlined_call_operand.vmem [shape: bf16[16,48], index: 21, kind: input, shape index: {}]   ;;  %s3180_s22 = inlined_call_operand.vmem [shape: f32[1,48], index: 22, kind: input, shape index: {}]   ;;  %s3181_s23 = inlined_call_operand.hbm [shape: f32[2,3,8,16], index: 23, kind: output, shape index: {0}]   ;;  %s3182_s24 = inlined_call_operand.hbm [shape: f32[2,3,8,16], index: 24, kind: output, shape index: {1}]  }
   0x1   :  { %3197 = sst [smem:[#allocation16_spill]] %s3158_s0 }
   0x2   :  { %3198 = sst [smem:[#allocation17_spill]] %s3159_s1 }
   0x3   :  { %3199 = sst [smem:[#allocation18_spill]] %s3160_s2 }
   0x4   :  { %3200 = sst [smem:[#allocation19_spill]] %s3161_s3 }
   0x5   :  { %3201 = sst [smem:[#allocation20_spill]] %s3162_s4 }
   0x6   :  { %3202 = sst [smem:[#allocation21_spill]] %s3163_s5 }
   0x7   :  { %3203 = sst [smem:[#allocation22_spill]] %s3164_s6 }
   0x8   :  { %3204 = sst [smem:[#allocation23_spill]] %s3165_s7 }
   0x9   :  { %3205 = sst [smem:[#allocation24_spill]] %s3166_s8 }
   0xa   :  { %3206 = sst [smem:[#allocation25_spill]] %s3167_s9 }
   0xb   :  { %3207 = sst [smem:[#allocation26_spill]] %s3168_s10 }
   0xc   :  { %3208 = sst [smem:[#allocation27_spill]] %s3169_s11 }
   0xd   :  { %30 = vsyncpa [#allocation6], 0 }
   0xe   :  { %32 = vsyncpa [#allocation6 + $0x1], 0 }
   0xf   :  { %33 = vsyncpa [#allocation8], 0 }
  0x10   :  { %35 = vsyncpa [#allocation8 + $0x1], 0  ;;  %s2744_s5 = smov 0   ;;  %s2746_s26 = smov 0  }
  0x11   :  { %s2748_s27 = smov 0   ;;  %s2750_s28 = smov 0  }
  0x12 LB: > { %3209 = sst [smem:[#allocation11_spill]] %s2592_s5  ;;  %s2765_s6 = sadd.s32 4294967295, %s2604_s28   ;;  %s2604_s28 = sphi %s2750_s28, %s3231_s28   ;;  %s2600_s27 = sphi %s2748_s27, %s3233_s27   ;;  %s2596_s26 = sphi %s2746_s26, %s3235_s26   ;;  %s2592_s5 = sphi %s2744_s5, %s3234_s5  }
  0x13   : > { %3210 = sst [smem:[#allocation12_spill]] %s2600_s27  ;;  %s2142_s2 = sadd.s32 4294967294, %s2604_s28  }
  0x14   : > { %s2769_s29 = sadd.s32 1, %s2604_s28   ;;  %s536_s0 = sadd.s32 1, %s2600_s27 }
  0x15   : > { %3211 = sst [smem:[#allocation13_spill]] %s2769_s29  ;;  %s533_s7 = ssub.s32 %s2604_s28, %s2769_s29 }
  0x16   : > { %p546_p0 = scmp.ne.s32.totalorder %s2600_s27, %s2596_s26  ;;  %p534_p1 = scmp.eq.s32.totalorder %s533_s7, 0 }
  0x17   : > { %p547_p2 = scmp.eq.s32.totalorder %s2765_s6, 1  ;;  %p552_p3 = scmp.ne.s32.totalorder %s2596_s26, %s2592_s5 }
  0x18   : > { %p553_p4 = scmp.eq.s32.totalorder %s2142_s2, 1  ;;  %p2145_p7 = scmp.ge.s32.totalorder %s2604_s28, 1 }
  0x19   : > { %s2780_s30 = scalar_select %p534_p1, %s2600_s27, %s536_s0  }
  0x1a   : > { %p2782_p5 = por %p547_p2, %p546_p0  ;;  %p2786_p6 = por %p553_p4, %p552_p3 }
  0x1b   : > { %3212 = sst [smem:[#allocation14_spill]] %s2780_s30  ;;  %p670_p8 = scmp.lt.s32.totalorder %s2604_s28, 3 }
  0x1c   : > { %s3214_s25 = scalar_select %p2786_p6, 1, 0 }
  0x1d   : > { %p671_p9 = pnand %p2145_p7, %p670_p8 }
  0x1e   : > { %3215 = sst [smem:[#allocation15_spill]] %s3214_s25  ;;  %p740_p10 = scmp.lt.s32.totalorder (!%p671_p9), %s2765_s6, 1 }
  0x1f   : > { %674 = sbr.rel (%p671_p9) target bundleno = 2922 (0xb6a), region = 112  ;;  %s3216_s1 = sld [smem:[#allocation17_spill]] (!%p671_p9) }
  0x20   : > { %s3217_s0 = sld [smem:[#allocation16_spill]] (!%p671_p9)  ;;  %s2609_s2 = smov (!%p671_p9), 16  }
  0x21   : > { %s3218_s29 = sld [smem:[#allocation19_spill]] (!%p671_p9)  ;;  %s2614_s30 = smov (!%p671_p9), 96  }
  0x22   : > { %s3219_s4 = sld [smem:[#allocation18_spill]] (!%p671_p9) }
  0x23   : > { %s3220_s25 = sld [smem:[#allocation21_spill]] (!%p671_p9) }
  0x24   : > { %v2606_v1 = vmov 0.0   ;;  %vm2607_vm0 = vmmov 0   ;;  %vm770_vm1 = vcmask 261120   ;;  %s741_s7 = scalar_select %p740_p10, %s2765_s6, 1  ;;  %vm883_vm2 = vcmask 130048  }
  0x25   : > { %v2460_v0 = vld [vmem:[%s3216_s1 + $0x8] sm:$0xff]   ;;  %2290 = vmatprep.subr.bf16.mxu0 %v2606_v1  ;;  %2298 = vmatprep.subr.bf16.mxu1 %v2606_v1  ;;  %v2461_v2 = vld [vmem:[%s3216_s1] sm:$0xff]   ;;  %1176 = vst.msk [vmem:[#allocation4] sm:$0xff] %vm770_vm1, %v2606_v1  ;;  %vm885_vm3 = vcmask 124928   ;;  %vm906_vm4 = vcmask 392192   ;;  %vm941_vm5 = vcmask 523264  }
  0x26   : > { %2291 = vmatpush3.bf16.msra.mxu0 %v2460_v0  ;;  %2294 = vmatprep.mubr.msk.bf16.mxu0 %vm2607_vm0, %v2606_v1  ;;  %s2146_s8 = sshll.u32 %s741_s7, 3  ;;  %884 = vst.msk [vmem:[#allocation2] sm:$0xff] %vm883_vm2, %v2606_v1  ;;  %vm1003_vm6 = vcmask 516096   ;;  %v2611_v38 = vmov 0   ;;  %s3223_s7 = sld [smem:[#allocation22_spill]]  ;;  %vm1177_vm7 = vcmask 254976  }
  0x27   : > { %2292 = vmatprep.subr.bf16.mxu0 %v2606_v1  ;;  %2302 = vmatprep.mubr.msk.bf16.mxu1 %vm2607_vm0, %v2606_v1  ;;  %s743_s1 = scalar_lea.vmem %s3217_s0, %s2146_s8  ;;  %v2462_v5 = vld [vmem:[%s3218_s29 + $0x8] sm:$0xff]   ;;  %v2463_v6 = vld [vmem:[%s3218_s29] sm:$0xff]   ;;  %886 = vst.msk [vmem:[#allocation2 + $0x8] sm:$0x7] %vm885_vm3, %v2606_v1  ;;  %s2608_s29 = smov 48   ;;  %vm1319_vm8 = vcmask 1043456  }
  0x28   : > { %v745_v3 = vld [vmem:[%s743_s1] sm:$0xff]  ;;  %2299 = vmatpush3.bf16.msra.mxu1 %v2462_v5  ;;  %s3221_s1 = sld [smem:[#allocation20_spill]]  ;;  %s3193_s0 = smov 32   ;;  %1008 = vst.msk [vmem:[#allocation3 + $0x9] sm:$0x1] %vm1003_vm6, %v2606_v1  ;;  %vm1242_vm9 = vcmask 785408  }
  0x29   : > { %v746_v4 = vpack.c.bf16 %v745_v3, %v745_v3  ;;  %2300 = vmatprep.subr.bf16.mxu1 %v2606_v1  ;;  %v2147_v7 = vld [vmem:[%s3219_s4] ss:$0 sm:$0xff]  ;;  %v2464_v15 = vld [vmem:[%s3220_s25 + $0x18] sm:$0xff]   ;;  %v2465_v16 = vld [vmem:[%s3220_s25 + $0x10] sm:$0xff]   ;;  %s3224_s5 = sld [smem:[#allocation23_spill]]  ;;  %s3228_s4 = smov 32  }
  0x2a   : > { %2293 = vmatpush3.bf16.msra.mxu0 %v2461_v2  ;;  %v2466_v19 = vld [vmem:[%s3220_s25 + $0x8] sm:$0xff]   ;;  %v2467_v24 = vld [vmem:[%s3220_s25] sm:$0xff]   ;;  %1178 = vst.msk [vmem:[#allocation4 + $0x8] sm:$0x3] %vm1177_vm7, %v2606_v1  ;;  %s3225_s11 = sld [smem:[#allocation27_spill]]  ;;  %vm1315_vm10 = vcmask 195584  }
  0x2b   : > { %2306 = vmatprep.subr.bf16.mxu0 %v2606_v1  ;;  %s3226_s9 = sld [smem:[#allocation25_spill]]  ;;  %s2403_s8 = smul.u32 384, %s2765_s6 }
  0x2c   : > { %2301 = vmatpush3.bf16.msra.mxu1 %v2463_v6  ;;  %v2160_v50 = vld [vmem:[%s3223_s7] ss:$0 sm:$0xff]  ;;  %s3227_s10 = sld [smem:[#allocation26_spill]] }
  0x2d   : > { %2295 = vmatmul.mubr.msk.bf16.vlgmr.msra.gmra.mxu0 %vm770_vm1, %v746_v4  ;;  %1119 = vmatprep.subr.bf16.mxu1 %v2611_v38 }
  0x2e   : > { %2314 = vmatprep.mubr.msk.bf16.mxu0 %vm2607_vm0, %v2606_v1  ;;  %2307 = vmatpush3.bf16.msra.mxu0 %v2464_v15  ;;  %v2151_v17 = vld [vmem:[%s3221_s1] ss:$0 sm:$0xff]  ;;  %s3222_s1 = sld [smem:[#allocation24_spill]] }
  0x2f   : > { %2308 = vmatprep.subr.bf16.mxu0 %v2606_v1  ;;  %v2161_v52 = vld [vmem:[%s3224_s5] ss:$0 sm:$0xff]  ;;  %s2612_s5 = smov 64  }
  0x30   : > { %v2480_v5 = vld [vmem:[%s3225_s11 + $0x28] sm:$0xff]   ;;  %v2481_v6 = vld [vmem:[%s3225_s11 + $0x20] sm:$0xff]  }
  0x31   : > { %v2485_v15 = vld [vmem:[%s3225_s11] sm:$0xff]  }
  0x32   : > { %2309 = vmatpush3.bf16.msra.mxu0 %v2465_v16 }
  0x33   : > { %2310 = vmatprep.subr.bf16.mxu0 %v2606_v1 }
  0x34   : > { %v2468_v37 = vld [vmem:[%s3222_s1 + $0x38] sm:$0xff]   ;;  %v2469_v39 = vld [vmem:[%s3222_s1 + $0x30] sm:$0xff]   ;;  %v2470_v40 = vld [vmem:[%s3222_s1 + $0x28] sm:$0xff]  }
  0x35   : > { %v2471_v41 = vld [vmem:[%s3222_s1 + $0x20] sm:$0xff]   ;;  %v2472_v42 = vld [vmem:[%s3222_s1 + $0x18] sm:$0xff]   ;;  %v2473_v43 = vld [vmem:[%s3222_s1 + $0x10] sm:$0xff]  }
  0x36   : > { %2311 = vmatpush3.bf16.msra.mxu0 %v2466_v19  ;;  %v2474_v44 = vld [vmem:[%s3222_s1 + $0x8] sm:$0xff]   ;;  %v2475_v45 = vld [vmem:[%s3222_s1] sm:$0xff]   ;;  %v2476_v46 = vld [vmem:[%s3222_s1 + $0x58] sm:$0xff]  }
  0x37   : > { %2312 = vmatprep.subr.bf16.mxu0 %v2606_v1  ;;  %v2477_v47 = vld [vmem:[%s3222_s1 + $0x50] sm:$0xff]   ;;  %v2478_v48 = vld [vmem:[%s3222_s1 + $0x48] sm:$0xff]   ;;  %v2479_v58 = vld [vmem:[%s3222_s1 + $0x40] sm:$0xff]   ;;  %s3087_s1 = scalar_lea.hbm %s3182_s24, %s2403_s8 }
  0x3a   : > { %2313 = vmatpush3.bf16.msra.mxu0 %v2467_v24  ;;  %v2486_v24 = vld [vmem:[%s3172_s14 + $0x8] ss:$0 sps:$4 sm:$0xff]  }
  0x3b   : > { %2318 = vmatprep.subr.bf16.mxu0 %v2606_v1 }
  0xed   : > { %v808_v8 = vpop.f32.mrf.mxu0 }
  0xee   : > { %v809_v9 = vadd.f32 %v2147_v7, %v808_v8  ;;  %v2482_v7 = vld [vmem:[%s3225_s11 + $0x18] sm:$0xff]   ;;  %v2483_v8 = vld [vmem:[%s3225_s11 + $0x10] sm:$0xff]  }
  0xef   : > { %v2296_v10 = vpop.f32.mrf.mxu0 }
  0xf0   : > { %v814_v11 = vmax.f32 %v809_v9, 0.0  ;;  %v2484_v9 = vld [vmem:[%s3225_s11 + $0x8] sm:$0xff]  }
  0xf1   : > { %v811_v12 = vpop.f32.mrf.mxu0 }
  0xf2   : > { %v815_v13 = vpack.c.bf16 %v814_v11, %v814_v11  ;;  %v2175_v11 = vld [vmem:[%s3226_s9] ss:$0 sm:$0xff] }
  0xf3   : > { %v2297_v14 = vpop.f32.mrf.mxu0 }
  0xf4   : > { %2303 = vmatmul.mubr.msk.bf16.vlgmr.msra.gmra.mxu1 %vm770_vm1, %v815_v13  ;;  %v2176_v13 = vld [vmem:[%s3227_s10] ss:$0 sm:$0xff] }
  0xf5   : > { %1120 = vmatpush1.bf16.msra.mxu1 %v2468_v37 }
  0xf6   : > { %1121 = vmatprep.subr.bf16.mxu1 %v2611_v38 }
  0xf9   : > { %1122 = vmatpush1.bf16.msra.mxu1 %v2469_v39 }
  0xfa   : > { %1123 = vmatprep.subr.bf16.mxu1 %v2611_v38 }
  0xfd   : > { %1124 = vmatpush1.bf16.msra.mxu1 %v2470_v40 }
  0xfe   : > { %1125 = vmatprep.subr.bf16.mxu1 %v2611_v38 }
 0x101   : > { %1126 = vmatpush1.bf16.msra.mxu1 %v2471_v41 }
 0x102   : > { %1127 = vmatprep.subr.bf16.mxu1 %v2611_v38 }
 0x105   : > { %1128 = vmatpush1.bf16.msra.mxu1 %v2472_v42 }
 0x106   : > { %1129 = vmatprep.subr.bf16.mxu1 %v2611_v38 }
 0x109   : > { %1130 = vmatpush1.bf16.msra.mxu1 %v2473_v43  ;;  %v2489_v43 = vld [vmem:[%s3173_s15] sm:$0xff]  }
 0x10a   : > { %1131 = vmatprep.subr.bf16.mxu1 %v2611_v38 }
 0x10d   : > { %1132 = vmatpush1.bf16.msra.mxu1 %v2474_v44 }
 0x10e   : > { %1133 = vmatprep.subr.bf16.mxu1 %v2611_v38 }
 0x111   : > { %1134 = vmatpush1.bf16.msra.mxu1 %v2475_v45 }
 0x112   : > { %1143 = vmatprep.subr.bf16.mxu1 %v2611_v38 }
 0x115   : > { %1144 = vmatpush2.bf16.msra.mxu1 %v2476_v46 }
 0x116   : > { %1145 = vmatprep.subr.bf16.mxu1 %v2611_v38 }
 0x119   : > { %1146 = vmatpush2.bf16.msra.mxu1 %v2477_v47 }
 0x11a   : > { %1147 = vmatprep.subr.bf16.mxu1 %v2611_v38 }
 0x11d   : > { %1148 = vmatpush2.bf16.msra.mxu1 %v2478_v48 }
 0x11e   : > { %1149 = vmatprep.subr.bf16.mxu1 %v2611_v38 }
 0x121   : > { %1150 = vmatpush2.bf16.msra.mxu1 %v2479_v58 }
 0x122   : > { %2348 = vmatprep.subr.bf16.mxu1 %v2606_v1 }
 0x1b4   : > { %v876_v18 = vpop.f32.mrf.mxu1 }
 0x1b5   : > { %v2844_v20 = vadd.f32 %v2151_v17, %v876_v18 }
 0x1b6   : > { %v2304_v21 = vpop.f32.mrf.mxu1 }
 0x1b7   : > { %v882_v22 = vmax.f32 %v2844_v20, 0.0  ;;  %v2491_v20 = vld [vmem:[%s3173_s15 + $0x8] sm:$0xff]  }
 0x1b8   : > { %v879_v23 = vpop.f32.mrf.mxu1 }
 0x1b9   : > { %887 = vst.msk [vmem:[#allocation2 + $0x2] sm:$0xff] %vm883_vm2, %v882_v22 }
 0x1ba   : > { %v2305_v25 = vpop.f32.mrf.mxu1 }
 0x1c0   : > { %v891_v26 = vld [vmem:[#allocation2 + $0x3] sm:$0xff] }
 0x1c1   : > { %v889_v27 = vld [vmem:[#allocation2 + $0x1] sm:$0xff]  ;;  %901 = vrot.lane.b32.xlu1 %v891_v26, %s2608_s29  ;;  %s3061_s29 = sand.u32 1, %s2596_s26  }
 0x1c2   : > { %893 = vrot.lane.b32.xlu0 %v889_v27, %s2609_s2  ;;  %v890_v28 = vld [vmem:[#allocation2 + $0x2] sm:$0xff]  ;;  %s2014_s9 = scalar_lea.sflag [#allocation6], %s3061_s29 }
 0x1c3   : > { %v888_v30 = vld [vmem:[#allocation2] sm:$0xff] }
 0x1c6   : > { %897 = vrot.lane.b32.xlu0 %v890_v28, %s3193_s0  ;;  %s2402_s0 = smul.u32 24, %s3061_s29 }
 0x1c8   : > { %s732_s27 = scalar_lea.vmem [#allocation5], %s2402_s0  ;;  %s739_s25 = scalar_lea.vmem [#allocation7], %s2402_s0 }
 0x1c9   : > { %s2032_s2 = sshll.u32 %s732_s27, 4  ;;  %s2048_s7 = sshll.u32 %s739_s25, 4  ;;  %s3073_s2 = int_to_ptr.vmem [resolvable:$true] %s2032_s2  ;;  %s3075_s7 = int_to_ptr.vmem [resolvable:$true] %s2048_s7 }
 0x1ca   : > { %s2514_s10 = scalar_lea.vmem %s3073_s2, 384  ;;  %s2615_s0 = smov [#allocation5]  }
 0x1cb   : > { %p2515_p11 = scmp.ne.s32.totalorder %s3073_s2, %s2514_s10 }
 0x1cd   : > { %p2516_p12 = pnand %p2515_p11, %p2782_p5 }
 0x1cf   : > { %p2517_p13 = pneg %p2516_p12 }
 0x233   : > { %v902_v33 = vpop.permute.xlu1 %901 }
 0x234   : > { %v894_v29 = vpop.permute.xlu0 %893 }
 0x235   : > { %v904_v31 = vsel %vm883_vm2, %v888_v30, %v894_v29 }
 0x238   : > { %v898_v32 = vpop.permute.xlu0 %897 }
 0x239   : > { %v905_v34 = vsel %vm770_vm1, %v904_v31, %v898_v32  ;;  %v1321_v31 = vsel %vm1319_vm8, %v2486_v24, 0  ;;  %v2487_v32 = vld [vmem:[%s3172_s14] sm:$0xff]  }
 0x23a   : > { %v907_v35 = vsel %vm906_vm4, %v905_v34, %v902_v33  ;;  %v2488_v33 = vld [vmem:[%s3175_s17] sm:$0xff]  }
 0x23b   : > { %v908_v36 = vpack.c.bf16 %v907_v35, %v907_v35  ;;  %v2184_v34 = vld [vmem:[%s3170_s12] ss:$0 sm:$0xff] }
 0x23d   : > { %2315 = vmatmul.mubr.msk.bf16.vlgmr.msra.gmra.mxu0 %vm941_vm5, %v908_v36  ;;  %v2185_v36 = vld [vmem:[%s3171_s13] ss:$0 sm:$0xff] }
 0x23e   : > { %2330 = vmatprep.mubr.msk.bf16.mxu0 %vm2607_vm0, %v2606_v1  ;;  %2319 = vmatpush3.bf16.msra.mxu0 %v2480_v5 }
 0x23f   : > { %2320 = vmatprep.subr.bf16.mxu0 %v2606_v1 }
 0x242   : > { %2321 = vmatpush3.bf16.msra.mxu0 %v2481_v6 }
 0x243   : > { %2322 = vmatprep.subr.bf16.mxu0 %v2606_v1 }
 0x246   : > { %2323 = vmatpush3.bf16.msra.mxu0 %v2482_v7 }
 0x247   : > { %2324 = vmatprep.subr.bf16.mxu0 %v2606_v1 }
 0x24a   : > { %2325 = vmatpush3.bf16.msra.mxu0 %v2483_v8 }
 0x24b   : > { %2326 = vmatprep.subr.bf16.mxu0 %v2606_v1 }
 0x24e   : > { %2327 = vmatpush3.bf16.msra.mxu0 %v2484_v9  ;;  %v2492_v9 = vld [vmem:[%s3175_s17 + $0x10] sm:$0xff]  }
 0x24f   : > { %2328 = vmatprep.subr.bf16.mxu0 %v2606_v1 }
 0x252   : > { %2329 = vmatpush3.bf16.msra.mxu0 %v2485_v15 }
 0x253   : > { %2334 = vmatprep.subr.bf16.mxu0 %v2606_v1 }
 0x2fd   : > { %v979_v49 = vpop.f32.mrf.mxu0 }
 0x2fe   : > { %v985_v51 = vmax.f32 %v979_v49, 0.0 }
 0x2ff   : > { %v2316_v53 = vpop.f32.mrf.mxu0 }
 0x300   : > { %v993_v54 = vmul.f32 %v2160_v50, %v985_v51  ;;  %v2490_v50 = vld [vmem:[%s3175_s17 + $0x8] sm:$0xff]  }
 0x301   : > { %v982_v55 = vpop.f32.mrf.mxu0 }
 0x302   : > { %v1001_v56 = vadd.f32 %v2161_v52, %v993_v54 }
 0x303   : > { %v2317_v57 = vpop.f32.mrf.mxu0 }
 0x304   : > { %1002 = vst.msk [vmem:[#allocation3 + $0x1] sm:$0xff] %vm941_vm5, %v1001_v56 }
 0x305   : > { %1004 = vst.msk [vmem:[#allocation3] sm:$0x1] %vm1003_vm6, %v1001_v56 }
 0x30c   : > { %v1005_v59 = vld [vmem:[#allocation3] sm:$0xff] }
 0x30d   : > { %v1006_v60 = vmax.f32 %v1005_v59, %v1001_v56  ;;  %1007 = vst.msk [vmem:[#allocation3] sm:$0x1] %vm1003_vm6, %v2606_v1 }
 0x30f   : > { %1009 = vst.msk [vmem:[#allocation3 + $0x1] sm:$0xff] %vm941_vm5, %v1006_v60 }
 0x316   : > { %v1011_v61 = vld [vmem:[#allocation3 + $0x1] sm:$0xff] }
 0x317   : > { %v1012_v62 = vld [vmem:[#allocation3 + $0x2] sm:$0xff]  ;;  %1014 = vrot.lane.b32.xlu1 %v1011_v61, %s2612_s5 }
 0x318   : > { %v1019_v63 = vpack.c.bf16 %v1012_v62, %v1012_v62  ;;  %v1010_v2 = vld [vmem:[#allocation3] sm:$0xff] }
 0x31a   : > { %2174 = vmatprep.mubr.msk.bf16.mxu1 %vm941_vm5, %v1019_v63  ;;  %v2189_v63 = vld [vmem:[%s3174_s16] ss:$0 sm:$0xff] }
 0x389   : > { %v1015_v0 = vpop.permute.xlu1 %1014 }
 0x38a   : > { %v1017_v3 = vsel %vm941_vm5, %v1010_v2, %v1015_v0 }
 0x38b   : > { %v1018_v4 = vpack.c.bf16 %v1017_v3, %v1017_v3 }
 0x38d   : > { %1152 = vmatmul.mubr.bf16.vlgmr.msra.gmra.mxu1 %v1018_v4 }
 0x38e   : > { %2350 = vmatprep.mubr.msk.bf16.mxu1 %vm2607_vm0, %v2606_v1  ;;  %2349 = vmatpush3.bf16.msra.mxu1 %v2488_v33 }
 0x38f   : > { %2360 = vmatprep.subr.bf16.mxu1 %v2606_v1 }
 0x44d   : > { %v1153_v10 = vpop.f32.mrf.mxu1 }
 0x44e   : > { %v1159_v12 = vmax.f32 %v1153_v10, 0.0  ;;  %v2493_v10 = vld [vmem:[%s3173_s15 + $0x10] sm:$0xff]  }
 0x44f   : > { %v1155_v14 = vpop.f32.mrf.mxu1 }
 0x450   : > { %v1167_v16 = vmul.f32 %v2175_v11, %v1159_v12  ;;  %v2205_v11 = vld [vmem:[%s3176_s18 + $0x1] ss:$0 sm:$0xff] }
 0x451   : > { %v1156_v17 = vpop.f32.mrf.mxu1 }
 0x452   : > { %v1175_v18 = vadd.f32 %v2176_v13, %v1167_v16 }
 0x453   : > { %v1157_v19 = vpop.f32.mrf.mxu1 }
 0x454   : > { %1179 = vst.msk [vmem:[#allocation4 + $0x1] sm:$0xff] %vm770_vm1, %v1175_v18 }
 0x45b   : > { %v1182_v21 = vld [vmem:[#allocation4 + $0x2] sm:$0xff] }
 0x45c   : > { %v1181_v23 = vld [vmem:[#allocation4 + $0x1] sm:$0xff]  ;;  %1188 = vrot.lane.b32.xlu1 %v1182_v21, %s2612_s5  ;;  %s2613_s5 = smov 112  }
 0x45d   : > { %1184 = vrot.lane.b32.xlu0 %v1181_v23, %s3228_s4  ;;  %v1180_v27 = vld [vmem:[#allocation4] sm:$0xff]  ;;  %s2518_s4 = sshll.u32 %s2615_s0, 4  ;;  %s2519_s4 = int_to_ptr.vmem [resolvable:$false] %s2518_s4 }
 0x45e   : > { %s2520_s11 = scalar_lea.vmem %s2519_s4, 768  ;;  %p2521_p0 = scmp.lt.s32.totalorder %s3073_s2, %s2519_s4 }
 0x45f   : > { %p2522_p1 = scmp.lt.s32.totalorder %s2520_s11, %s2514_s10 }
 0x461   : > { %p2523_p2 = por %p2522_p1, %p2521_p0 }
 0x463   : > { %p2524_p3 = pnand %p2523_p2, %p2517_p13 }
 0x4ce   : > { %v1189_v25 = vpop.permute.xlu1 %1188 }
 0x4cf   : > { %v1185_v26 = vpop.permute.xlu0 %1184 }
 0x4d0   : > { %v1191_v28 = vsel %vm770_vm1, %v1180_v27, %v1185_v26  ;;  %v2199_v26 = vld [vmem:[%s3174_s16 + $0x1] ss:$0 sm:$0xff] }
 0x4d1   : > { %v1192_v29 = vsel %vm941_vm5, %v1191_v28, %v1189_v25 }
 0x4d2   : > { %v1193_v30 = vpack.c.bf16 %v1192_v29, %v1192_v29 }
 0x4d4   : > { %2331 = vmatmul.mubr.msk.bf16.vlgmr.msra.gmra.mxu0 %vm1242_vm9, %v1193_v30 }
 0x4d5   : > { %2335 = vmatpush3.bf16.msra.mxu0 %v1321_v31  ;;  %2338 = vmatprep.mubr.msk.bf16.mxu0 %vm2607_vm0, %v2606_v1 }
 0x4d6   : > { %2336 = vmatprep.subr.bf16.mxu0 %v2606_v1 }
 0x4d9   : > { %2337 = vmatpush3.bf16.msra.mxu0 %v2487_v32 }
 0x4da   : > { %2342 = vmatprep.subr.bf16.mxu0 %v2606_v1 }
 0x594   : > { %v1280_v35 = vpop.f32.mrf.mxu0 }
 0x595   : > { %v1293_v37 = vmul.f32 %v2184_v34, %v1280_v35  ;;  %v2494_v35 = vld [vmem:[%s3175_s17 + $0x18] sm:$0xff]  }
 0x596   : > { %v2332_v38 = vpop.f32.mrf.mxu0 }
 0x597   : > { %v1301_v39 = vadd.f32 %v2185_v36, %v1293_v37  ;;  %v2495_v36 = vld [vmem:[%s3173_s15 + $0x18] sm:$0xff]   ;;  %v2218_v37 = vld [vmem:[%s3176_s18 + $0x2] ss:$0 sm:$0xff] }
 0x598   : > { %v1283_v40 = vpop.f32.mrf.mxu0 }
 0x599   : > { %v1302_v41 = vpack.c.bf16 %v1301_v39, %v1301_v39 }
 0x59a   : > { %v2333_v42 = vpop.f32.mrf.mxu0 }
 0x59b   : > { %2339 = vmatmul.mubr.msk.bf16.vlgmr.msra.gmra.mxu0 %vm1315_vm10, %v1302_v41 }
 0x59c   : > { %2344 = vmatprep.mubr.msk.bf16.mxu0 %vm2607_vm0, %v2606_v1  ;;  %2343 = vmatpush3.bf16.msra.mxu0 %v2489_v43 }
 0x59d   : > { %2354 = vmatprep.subr.bf16.mxu0 %v2606_v1 }
 0x65b   : > { %v1357_v44 = vpop.f32.mrf.mxu0 }
 0x65c   : > { %v1358_v45 = vadd.f32 %v1357_v44, %v882_v22  ;;  %v2192_v22 = vld [vmem:[%s3176_s18] ss:$0 sm:$0xff] }
 0x65d   : > { %v2340_v46 = vpop.f32.mrf.mxu0 }
 0x65e   : > { %v1363_v47 = vpack.c.bf16 %v1358_v45, %v1358_v45 }
 0x65f   : > { %v1360_v48 = vpop.f32.mrf.mxu0 }
 0x660   : > { %2345 = vmatmul.mubr.msk.bf16.vlgmr.msra.gmra.mxu0 %vm883_vm2, %v1363_v47  ;;  %2351 = vmatmul.mubr.msk.bf16.vlgmr.msra.gmra.mxu1 %vm883_vm2, %v1363_v47 }
 0x661   : > { %v2341_v49 = vpop.f32.mrf.mxu0  ;;  %2356 = vmatprep.mubr.msk.bf16.mxu0 %vm2607_vm0, %v2606_v1  ;;  %2362 = vmatprep.mubr.msk.bf16.mxu1 %vm2607_vm0, %v2606_v1 }
 0x662   : > { %2361 = vmatpush3.bf16.msra.mxu1 %v2490_v50  ;;  %2355 = vmatpush3.bf16.msra.mxu0 %v2491_v20  ;;  %v2212_v50 = vld [vmem:[%s3174_s16 + $0x2] ss:$0 sm:$0xff] }
 0x663   : > { %2372 = vmatprep.subr.bf16.mxu1 %v2606_v1  ;;  %2366 = vmatprep.subr.bf16.mxu0 %v2606_v1 }
 0x720   : > { %v1416_v51 = vpop.f32.mrf.mxu0  ;;  %v1472_v52 = vpop.f32.mrf.mxu1 }
 0x721   : > { %v1473_v53 = vadd.f32 %v2192_v22, %v1472_v52  ;;  %v1417_v0 = vadd.f32 %v2189_v63, %v1416_v51 }
 0x722   : > { %v2346_v54 = vpop.f32.mrf.mxu0  ;;  %v2352_v55 = vpop.f32.mrf.mxu1 }
 0x723   : > { %v2195_v56 = vmul.f32 -1.442695, %v1473_v53  ;;  %v1422_v3 = vmax.f32 %v1417_v0, 0.0 }
 0x724   : > { %v1419_v57 = vpop.f32.mrf.mxu0  ;;  %v1475_v58 = vpop.f32.mrf.mxu1 }
 0x725   : > { %2498 = vpow2.f32 %v2195_v56  ;;  %v2496_v57 = vld [vmem:[%s3177_s19] sm:$0xff]  }
 0x726   : > { %v2347_v59 = vpop.f32.mrf.mxu0  ;;  %v2353_v60 = vpop.f32.mrf.mxu1  ;;  %v2497_v58 = vld [vmem:[%s3179_s21] sm:$0xff]  }
 0x727   : > { %v2231_v59 = vld [vmem:[%s3176_s18 + $0x3] ss:$0 sm:$0xff] }
 0x732   : > { %v2499_v61 = vpop.eup %2498 }
 0x733   : > { %v1481_v62 = vadd.f32 1.0, %v2499_v61 }
 0x735   : > { %2500 = vrcp.f32 %v1481_v62 }
 0x742   : > { %v2501_v2 = vpop.eup %2500 }
 0x743   : > { %v1485_v4 = vsub.f32 1.0, %v2501_v2  ;;  %v1484_v5 = vmul.f32 %v2501_v2, %v1422_v3 }
 0x745   : > { %v1486_v6 = vmul.f32 %v1485_v4, %v1358_v45 }
 0x747   : > { %v1487_v7 = vadd.f32 %v1486_v6, %v1484_v5 }
 0x749   : > { %v1488_v8 = vpack.c.bf16 %v1487_v7, %v1487_v7 }
 0x74b   : > { %2357 = vmatmul.mubr.msk.bf16.vlgmr.msra.gmra.mxu0 %vm883_vm2, %v1488_v8  ;;  %2363 = vmatmul.mubr.msk.bf16.vlgmr.msra.gmra.mxu1 %vm883_vm2, %v1488_v8  ;;  %v2225_v8 = vld [vmem:[%s3174_s16 + $0x3] ss:$0 sm:$0xff] }
 0x74c   : > { %2368 = vmatprep.mubr.msk.bf16.mxu0 %vm2607_vm0, %v2606_v1  ;;  %2374 = vmatprep.mubr.msk.bf16.mxu1 %vm2607_vm0, %v2606_v1 }
 0x74d   : > { %2373 = vmatpush3.bf16.msra.mxu1 %v2492_v9  ;;  %2367 = vmatpush3.bf16.msra.mxu0 %v2493_v10 }
 0x74e   : > { %2384 = vmatprep.subr.bf16.mxu1 %v2606_v1  ;;  %2378 = vmatprep.subr.bf16.mxu0 %v2606_v1 }
 0x80b   : > { %v1543_v12 = vpop.f32.mrf.mxu0  ;;  %v1601_v13 = vpop.f32.mrf.mxu1 }
 0x80c   : > { %v1602_v14 = vadd.f32 %v2205_v11, %v1601_v13  ;;  %v1544_v27 = vadd.f32 %v2199_v26, %v1543_v12 }
 0x80d   : > { %v2358_v15 = vpop.f32.mrf.mxu0  ;;  %v2364_v16 = vpop.f32.mrf.mxu1 }
 0x80e   : > { %v2208_v17 = vmul.f32 -1.442695, %v1602_v14  ;;  %v1549_v29 = vmax.f32 %v1544_v27, 0.0 }
 0x80f   : > { %v1546_v18 = vpop.f32.mrf.mxu0  ;;  %v1604_v19 = vpop.f32.mrf.mxu1 }
 0x810   : > { %2502 = vpow2.f32 %v2208_v17  ;;  %v2235_v17 = vld [vmem:[%s3178_s20] ss:$0 sm:$0xff] }
 0x811   : > { %v2359_v21 = vpop.f32.mrf.mxu0  ;;  %v2365_v23 = vpop.f32.mrf.mxu1  ;;  %v2238_v18 = vld [vmem:[%s3180_s22] ss:$0 sm:$0xff] }
 0x81d   : > { %v2503_v24 = vpop.eup %2502 }
 0x81e   : > { %v1610_v25 = vadd.f32 1.0, %v2503_v24 }
 0x820   : > { %2504 = vrcp.f32 %v1610_v25 }
 0x82d   : > { %v2505_v28 = vpop.eup %2504 }
 0x82e   : > { %v1614_v30 = vsub.f32 1.0, %v2505_v28  ;;  %v1613_v31 = vmul.f32 %v2505_v28, %v1549_v29 }
 0x830   : > { %v1615_v32 = vmul.f32 %v1614_v30, %v1487_v7 }
 0x832   : > { %v1616_v33 = vadd.f32 %v1615_v32, %v1613_v31 }
 0x834   : > { %v1617_v34 = vpack.c.bf16 %v1616_v33, %v1616_v33 }
 0x836   : > { %2369 = vmatmul.mubr.msk.bf16.vlgmr.msra.gmra.mxu0 %vm883_vm2, %v1617_v34  ;;  %2375 = vmatmul.mubr.msk.bf16.vlgmr.msra.gmra.mxu1 %vm883_vm2, %v1617_v34 }
 0x837   : > { %2380 = vmatprep.mubr.msk.bf16.mxu0 %vm2607_vm0, %v2606_v1  ;;  %2386 = vmatprep.mubr.msk.bf16.mxu1 %vm2607_vm0, %v2606_v1 }
 0x838   : > { %2385 = vmatpush3.bf16.msra.mxu1 %v2494_v35  ;;  %2379 = vmatpush3.bf16.msra.mxu0 %v2495_v36 }
 0x839   : > { %2390 = vmatprep.subr.bf16.mxu0 %v2606_v1  ;;  %2396 = vmatprep.subr.bf16.mxu1 %v2606_v1 }
 0x8f6   : > { %v1672_v38 = vpop.f32.mrf.mxu0  ;;  %v1730_v39 = vpop.f32.mrf.mxu1 }
 0x8f7   : > { %v1731_v40 = vadd.f32 %v2218_v37, %v1730_v39  ;;  %v1673_v20 = vadd.f32 %v2212_v50, %v1672_v38 }
 0x8f8   : > { %v2370_v41 = vpop.f32.mrf.mxu0  ;;  %v2376_v42 = vpop.f32.mrf.mxu1 }
 0x8f9   : > { %v2221_v43 = vmul.f32 -1.442695, %v1731_v40  ;;  %v1678_v51 = vmax.f32 %v1673_v20, 0.0 }
 0x8fa   : > { %v1675_v44 = vpop.f32.mrf.mxu0  ;;  %v1733_v45 = vpop.f32.mrf.mxu1 }
 0x8fb   : > { %2506 = vpow2.f32 %v2221_v43 }
 0x8fc   : > { %v2371_v46 = vpop.f32.mrf.mxu0  ;;  %v2377_v47 = vpop.f32.mrf.mxu1 }
 0x908   : > { %v2507_v48 = vpop.eup %2506 }
 0x909   : > { %v1739_v49 = vadd.f32 1.0, %v2507_v48 }
 0x90b   : > { %2508 = vrcp.f32 %v1739_v49 }
 0x918   : > { %v2509_v22 = vpop.eup %2508 }
 0x919   : > { %v1743_v52 = vsub.f32 1.0, %v2509_v22  ;;  %v1742_v53 = vmul.f32 %v2509_v22, %v1678_v51 }
 0x91b   : > { %v1744_v54 = vmul.f32 %v1743_v52, %v1616_v33 }
 0x91d   : > { %v1745_v55 = vadd.f32 %v1744_v54, %v1742_v53 }
 0x91f   : > { %v1746_v56 = vpack.c.bf16 %v1745_v55, %v1745_v55 }
 0x921   : > { %2381 = vmatmul.mubr.msk.bf16.vlgmr.msra.gmra.mxu0 %vm883_vm2, %v1746_v56  ;;  %2387 = vmatmul.mubr.msk.bf16.vlgmr.msra.gmra.mxu1 %vm883_vm2, %v1746_v56 }
 0x922   : > { %2392 = vmatprep.mubr.msk.bf16.mxu0 %vm2607_vm0, %v2606_v1  ;;  %2398 = vmatprep.mubr.msk.bf16.mxu1 %vm2607_vm0, %v2606_v1 }
 0x923   : > { %2391 = vmatpush3.bf16.msra.mxu0 %v2496_v57  ;;  %2397 = vmatpush3.bf16.msra.mxu1 %v2497_v58 }
 0x9e1   : > { %v1801_v60 = vpop.f32.mrf.mxu0  ;;  %v1859_v61 = vpop.f32.mrf.mxu1 }
 0x9e2   : > { %v1860_v62 = vadd.f32 %v2231_v59, %v1859_v61  ;;  %v1802_v9 = vadd.f32 %v2225_v8, %v1801_v60 }
 0x9e3   : > { %v2382_v63 = vpop.f32.mrf.mxu0  ;;  %v2388_v0 = vpop.f32.mrf.mxu1 }
 0x9e4   : > { %v2234_v1 = vmul.f32 -1.442695, %v1860_v62  ;;  %v1807_v11 = vmax.f32 %v1802_v9, 0.0 }
 0x9e5   : > { %v1804_v2 = vpop.f32.mrf.mxu0  ;;  %v1862_v3 = vpop.f32.mrf.mxu1 }
 0x9e6   : > { %2510 = vpow2.f32 %v2234_v1 }
 0x9e7   : > { %v2383_v4 = vpop.f32.mrf.mxu0  ;;  %v2389_v5 = vpop.f32.mrf.mxu1 }
 0x9f3   : > { %v2511_v6 = vpop.eup %2510 }
 0x9f4   : > { %v1868_v7 = vadd.f32 1.0, %v2511_v6 }
 0x9f6   : > { %2512 = vrcp.f32 %v1868_v7 }
 0xa03   : > { %v2513_v10 = vpop.eup %2512 }
 0xa04   : > { %v1872_v12 = vsub.f32 1.0, %v2513_v10  ;;  %v1871_v13 = vmul.f32 %v2513_v10, %v1807_v11 }
 0xa06   : > { %v1873_v14 = vmul.f32 %v1872_v12, %v1745_v55 }
 0xa08   : > { %v1874_v15 = vadd.f32 %v1873_v14, %v1871_v13 }
 0xa0a   : > { %v1875_v16 = vpack.c.bf16 %v1874_v15, %v1874_v15 }
 0xa0c   : > { %2393 = vmatmul.mubr.msk.bf16.vlgmr.msra.gmra.mxu0 %vm883_vm2, %v1875_v16  ;;  %2399 = vmatmul.mubr.msk.bf16.vlgmr.msra.gmra.mxu1 %vm883_vm2, %v1875_v16 }
 0xacc   : > { %v1928_v19 = vpop.f32.mrf.mxu0  ;;  %v1983_v21 = vpop.f32.mrf.mxu1 }
 0xacd   : > { %v1929_v23 = vadd.f32 %v2235_v17, %v1928_v19  ;;  %v1984_v24 = vadd.f32 %v2238_v18, %v1983_v21 }
 0xace   : > { %v2394_v25 = vpop.f32.mrf.mxu0  ;;  %v2400_v26 = vpop.f32.mrf.mxu1 }
 0xacf   : > { %1989 = vst.msk [vmem:[%s732_s27] sm:$0xff] %vm883_vm2, %v1929_v23  ;;  %1990 = vst.msk [vmem:[%s739_s25] sm:$0xff] %vm883_vm2, %v1984_v24  ;;  %1998 = vrot.lane.b32.xlu1 %v1984_v24, %s2613_s5  ;;  %1992 = vrot.lane.b32.xlu0 %v1929_v23, %s2613_s5  ;;  %s3082_s5 = scalar_lea.hbm %s3181_s23, %s2403_s8 }
 0xad0   : > { %v1931_v27 = vpop.f32.mrf.mxu0  ;;  %v1986_v28 = vpop.f32.mrf.mxu1 }
 0xad2   : > { %v2395_v29 = vpop.f32.mrf.mxu0  ;;  %v2401_v30 = vpop.f32.mrf.mxu1 }
 0xad3   : > { %2008 = vrot.lane.b32.xlu1 %v1984_v24, %s2614_s30  ;;  %2003 = vrot.lane.b32.xlu0 %v1929_v23, %s2614_s30 }
 0xb41   : > { %v1999_v31 = vpop.permute.xlu1 %1998  ;;  %v1993_v32 = vpop.permute.xlu0 %1992 }
 0xb42   : > { %2242 = vst.msk [vmem:[%s739_s25 + $0x8] sm:$0xff] %vm883_vm2, %v1999_v31  ;;  %2241 = vst.msk [vmem:[%s732_s27 + $0x8] sm:$0xff] %vm883_vm2, %v1993_v32 }
 0xb45   : > { %v2009_v33 = vpop.permute.xlu1 %2008  ;;  %v2004_v34 = vpop.permute.xlu0 %2003 }
 0xb46   : > { %2244 = vst.msk [vmem:[%s739_s25 + $0x10] sm:$0xff] %vm883_vm2, %v2009_v33  ;;  %2243 = vst.msk [vmem:[%s732_s27 + $0x10] sm:$0xff] %vm883_vm2, %v2004_v34 }
 0xb47   : > { %2527 = shalt.err (!%p2524_p3)
}
 0xb48   : > { %s2528_s27 = scalar_lea.hbm %s3082_s5, 384  ;;  %s2532_s6 = scalar_lea.hbm %s3181_s23, 768 }
 0xb49   : > { %p2529_p4 = scmp.ne.s32.totalorder %s3082_s5, %s2528_s27  ;;  %p2533_p9 = scmp.lt.s32.totalorder %s3082_s5, %s3181_s23 }
 0xb4a   : > { %p2534_p10 = scmp.lt.s32.totalorder %s2532_s6, %s2528_s27 }
 0xb4b   : > { %p2530_p7 = pnand %p2529_p4, %p2782_p5 }
 0xb4c   : > { %p2535_p11 = por %p2534_p10, %p2533_p9 }
 0xb4d   : > { %p2531_p8 = pneg %p2530_p7 }
 0xb4f   : > { %p2536_p12 = pnand %p2535_p11, %p2531_p8 }
 0xb51   : > { %2539 = shalt.err (!%p2536_p12)
}
 0xb52   : > { %s2616_s10 = smov 128   ;;  %s2617_s11 = smov 8  }
 0xb53   : > { %2405 = dma.vmem_to_hbm [thread:$0]  (%p2782_p5), %s3073_s2, 384, %s3082_s5, %s2014_s9, %s2616_s10, %s2616_s10, %s2617_s11  }
 0xb54   : > { %s2019_s4 = scalar_lea.sflag [#allocation8], %s3061_s29  ;;  %s2540_s27 = scalar_lea.vmem %s3075_s7, 384 }
 0xb55   : > { %p2541_p13 = scmp.ne.s32.totalorder %s3075_s7, %s2540_s27  ;;  %s2618_s25 = smov [#allocation7]  }
 0xb56   : > { %s2544_s8 = sshll.u32 %s2618_s25, 4  ;;  %s2545_s8 = int_to_ptr.vmem [resolvable:$false] %s2544_s8 }
 0xb57   : > { %p2542_p0 = pnand %p2541_p13, %p2782_p5  ;;  %s2546_s6 = scalar_lea.vmem %s2545_s8, 768 }
 0xb58   : > { %p2547_p2 = scmp.lt.s32.totalorder %s3075_s7, %s2545_s8  ;;  %p2548_p3 = scmp.lt.s32.totalorder %s2546_s6, %s2540_s27 }
 0xb59   : > { %p2543_p1 = pneg %p2542_p0 }
 0xb5a   : > { %p2549_p4 = por %p2548_p3, %p2547_p2 }
 0xb5c   : > { %p2550_p7 = pnand %p2549_p4, %p2543_p1 }
 0xb5e   : > { %2553 = shalt.err (!%p2550_p7)
}
 0xb5f   : > { %s2554_s9 = scalar_lea.hbm %s3087_s1, 384  ;;  %s2558_s5 = scalar_lea.hbm %s3182_s24, 768 }
 0xb60   : > { %p2555_p8 = scmp.ne.s32.totalorder %s3087_s1, %s2554_s9  ;;  %p2559_p11 = scmp.lt.s32.totalorder %s3087_s1, %s3182_s24 }
 0xb61   : > { %p2560_p12 = scmp.lt.s32.totalorder %s2558_s5, %s2554_s9 }
 0xb62   : > { %p2556_p9 = pnand %p2555_p8, %p2782_p5 }
 0xb63   : > { %p2561_p13 = por %p2560_p12, %p2559_p11 }
 0xb64   : > { %p2557_p10 = pneg %p2556_p9 }
 0xb66   : > { %p2562_p0 = pnand %p2561_p13, %p2557_p10 }
 0xb68   : > { %2565 = shalt.err (!%p2562_p0)
}
 0xb69   : > { %2406 = dma.vmem_to_hbm [thread:$0]  (%p2782_p5), %s3075_s7, 384, %s3087_s1, %s2019_s4, %s2616_s10, %s2616_s10, %s2617_s11  }
 0xb6a PF: > { %s3229_s27 = sld [smem:[#allocation11_spill]]  ;;  %p2416_p1 = scmp.ge.s32.totalorder %s2604_s28, 2 }
 0xb6c   : > { %p2410_p2 = pnand %p2416_p1, %p2786_p6 }
 0xb6e   : > { %p2411_p3 = pneg %p2410_p2 }
 0xb70   : > { %s2063_s8 = sand.u32 1, %s3229_s27  }
 0xb71   : > { %s2064_s6 = scalar_lea.sflag [#allocation6], %s2063_s8 }
 0xb72   : > { %2583 = dma.done.wait (%p2411_p3), %s2064_s6, 384  }
 0xb73   : > { %2585 = vsyncadd (%p2411_p3), %s2064_s6, 4294966912  ;;  %s2073_s9 = scalar_lea.sflag [#allocation8], %s2063_s8 }
 0xb74   : > { %2587 = dma.done.wait (%p2411_p3), %s2073_s9, 384  }
 0xb75   : > { %2589 = vsyncadd (%p2411_p3), %s2073_s9, 4294966912  ;;  %s3231_s28 = sld [smem:[#allocation13_spill]]  ;;  %s3234_s5 = smov %s2596_s26 }
 0xb76   : > { %s3232_s3 = sld [smem:[#allocation12_spill]] }
 0xb77   : > { %s3233_s27 = sld [smem:[#allocation14_spill]] }
 0xb7b   : > { %p38_p5 = scmp.ge.s32.totalorder %s3231_s28, 4  }
 0xb7c   : > { %s3235_s26 = smov %s3232_s3 }
 0xb7d   :  { %40 = sbr.rel (!%p38_p5) target bundleno = 18 (0x12), region = 180 }
 0xb82   :  { %2078 = vsyncpa [#allocation6], 1 }
 0xb83   :  { %2080 = vsyncpa [#allocation6 + $0x1], 1 }
 0xb84   :  { %2081 = vsyncpa [#allocation8], 1 }
 0xb85   :  { %2083 = vsyncpa [#allocation8 + $0x1], 1 }

</bundles_post_ra>
